<compile_context>
chip_gen: v6e
topology: v6e:2x2x1
jax: 0.10.0
libtpu: 0.0.40
codegen_flags: <defaults>
</compile_context>

<pallas_src>
import functools

import jax
import jax.numpy as jnp
from jax import lax
from jax.experimental import pallas as pl
from jax.experimental.pallas import tpu as pltpu

_Q_PAD = 8   # extra weight rows so the q row rides the fused k/v matmul


def _linear_attn_ffn_kernel(x_ref, wkvq_ref, bkvq_ref, wo_ref, w1_ref, b1_ref, w2_ref,
                            cvec_ref, out_ref, tmp_ref, *, n_per_patch, p_blk, ffn_chunk):
    N = n_per_patch
    C = out_ref.shape[0]
    T = out_ref.shape[1]                     # = p_blk * N tokens in this block

    x = x_ref[...].astype(jnp.float32)       # (C, T)

    cvec = cvec_ref[...]                     # folded per-channel constants (C, 6)
    bn1_s, bn1_b = cvec[:, 0:1], cvec[:, 1:2]
    bn2_s, bn2_b = cvec[:, 2:3], cvec[:, 3:4]
    bo, b2 = cvec[:, 4:5], cvec[:, 5:6]

    # ------------------------------ PreNormAttn ------------------------------
    xn = x * bn1_s + bn1_b                                              # BN (eval), f32
    # fused q/k/v projection: one (2C+8, C) @ (C, T) bf16 matmul, f32 accumulation.
    kvq = jnp.dot(wkvq_ref[...], xn.astype(jnp.bfloat16),
                  preferred_element_type=jnp.float32) + bkvq_ref[...]   # (2C+8, T)
    k = kvq[:C, :]
    v = kvq[C:2 * C, :]
    q = kvq[2 * C:2 * C + 1, :]                                         # (1, T)

    # Per-patch softmax over each pixel's N tokens + context sum + broadcast back.
    # p_blk is small (pixels per patch, typically 4): a static unrolled loop of lane
    # slices -- EUP exp, XLU lane reductions, VPU broadcast multiplies.  No MXU
    # passes, no one-hot / mask tensors.
    for pix in range(p_blk):
        a = pix * N
        q_seg = q[:, a:a + N]                                           # (1, N)
        e = jnp.exp(q_seg - jnp.max(q_seg, axis=1, keepdims=True))
        scores = e * pl.reciprocal(jnp.sum(e, axis=1, keepdims=True), approx=True)
        ctx = jnp.sum(k[:, a:a + N] * scores, axis=1, keepdims=True)    # (C, 1)
        tmp_ref[:, a:a + N] = jnp.maximum(v[:, a:a + N], 0.0) * ctx     # relu(v) * ctx

    o = jnp.dot(wo_ref[...], tmp_ref[...].astype(jnp.bfloat16),
                preferred_element_type=jnp.float32) + bo                # (C, T)
    tmp_ref[...] = x + o                      # x1 (residual 1), staged for the FFN

    # ------------------------------- PreNormFfn -------------------------------
    # Token-chunked so the (F, chunk) activations (not (F, T)) bound the live set
    # (keeps production C/F/T inside v7x's 64 MiB VMEM).
    n_chunks = T // ffn_chunk

    def ffn_body(x1c):
        xn2 = x1c * bn2_s + bn2_b
        h = jnp.dot(w1_ref[...], xn2.astype(jnp.bfloat16),
                    preferred_element_type=jnp.float32) + b1_ref[...]
        h = h * jax.nn.sigmoid(h)                                       # SiLU
        f = jnp.dot(w2_ref[...], h.astype(jnp.bfloat16),
                    preferred_element_type=jnp.float32) + b2
        return (x1c + f).astype(out_ref.dtype)                          # residual 2

    if n_chunks == 1:
        out_ref[...] = ffn_body(tmp_ref[...])
    else:
        def chunk_step(ci, carry):
            start = ci * ffn_chunk
            if ffn_chunk % 128 == 0:
                start = pl.multiple_of(start, 128)
            sl = pl.ds(start, ffn_chunk)
            out_ref[:, sl] = ffn_body(tmp_ref[:, sl])
            return carry
        lax.fori_loop(0, n_chunks, chunk_step, 0)


def prepare_kernel_params(p, eps=1e-5):
    """One-time export-style transform: fold BN stats, fuse q/k/v weights, pack the
    per-channel f32 constants into one (C, 6) array, cast matmul weights to bf16."""
    C = p["wk"].shape[0]
    s1 = p["bn1_gamma"] / jnp.sqrt(p["bn1_var"] + eps)
    t1 = p["bn1_beta"] - p["bn1_mean"] * s1
    s2 = p["bn2_gamma"] / jnp.sqrt(p["bn2_var"] + eps)
    t2 = p["bn2_beta"] - p["bn2_mean"] * s2
    cvec = jnp.stack([s1, t1, s2, t2, p["bo"], p["b2"]], axis=1).astype(jnp.float32)  # (C, 6)
    # TODO(synk): for production variants with C not a multiple of 128, pad the
    #             contraction dim here (and pad/slice activations) for full MXU rows.
    wq_rows = jnp.zeros((_Q_PAD, C), jnp.float32).at[0].set(p["wq"][0])
    bq_rows = jnp.zeros((_Q_PAD,), jnp.float32).at[0].set(p["bq"][0])
    wkvq = jnp.concatenate([p["wk"], p["wv"], wq_rows], axis=0).astype(jnp.bfloat16)  # (2C+8, C)
    bkvq = jnp.concatenate([p["bk"], p["bv"], bq_rows]).reshape(-1, 1).astype(jnp.float32)
    wo = p["wo"].astype(jnp.bfloat16)                                                 # (C, C)
    w1 = p["w1"].astype(jnp.bfloat16)                                                 # (F, C)
    b1 = p["b1"].reshape(-1, 1).astype(jnp.float32)                                   # (F, 1)
    w2 = p["w2"].astype(jnp.bfloat16)                                                 # (C, F)
    return wkvq, bkvq, wo, w1, b1, w2, cvec


def _default_vmem_limit_bytes():
    # v7x: 64 MiB physical VMEM per TensorCore -> ~48 MiB scoped leaves headroom.
    # v5e/v6e: 128 MiB physical -> let the compiler use ~96 MiB for bigger tiles.
    try:
        kind = jax.devices()[0].device_kind.lower()
    except Exception:
        kind = ""
    return (48 if "7" in kind else 96) * 1024 * 1024


def _choose_p_blk(P, N, target_lanes):
    # Largest divisor of P whose token block is 128-lane aligned and <= target_lanes
    # (a T_blk multiple of 256 is ideal for the 256-wide v6e/v7x MXU); fall back to
    # the full extent, which satisfies Mosaic's "last block dim == full array" rule.
    aligned = [c for c in range(1, P + 1) if P % c == 0 and (c * N) % 128 == 0]
    if not aligned:
        return P
    fitting = [c for c in aligned if c * N <= target_lanes]
    return max(fitting) if fitting else min(aligned)


def _choose_ffn_chunk(t_blk, target):
    # Largest divisor of the token block <= target (keeps the fori_loop uniform).
    if target is None or target >= t_blk:
        return t_blk
    for c in range(max(1, target), 0, -1):
        if t_blk % c == 0:
            return c
    return t_blk


def linear_attn_ffn(x_nchw, params, *, p_blk=None, target_lanes=1024, ffn_chunk=512,
                    vmem_limit_bytes=None, weight_buffers=1, io_dtype=None):
    """Eval-mode LinearAttnFFN forward.  x_nchw: (B, C, P, N)."""
    B, C, P, N = x_nchw.shape
    F = params["w1"].shape[0]
    if p_blk is None:
        # Aim for B * (P // p_blk) >= ~8 grid steps (and even, for v7x's two
        # TensorCores); lower target_lanes for small-batch serving to get there.
        p_blk = _choose_p_blk(P, N, target_lanes)
    assert P % p_blk == 0
    T_blk = p_blk * N
    T = P * N
    # Mosaic block constraint: last block dim must be the full extent or 128-aligned.
    assert p_blk == P or T_blk % 128 == 0, (p_blk, N)
    ffn_chunk = _choose_ffn_chunk(T_blk, ffn_chunk)
    if vmem_limit_bytes is None:
        vmem_limit_bytes = _default_vmem_limit_bytes()

    x = x_nchw.reshape(B, C, T)            # trailing-dim merge: free, NO transpose
    if io_dtype is not None:               # bf16 I/O halves HBM traffic (v5e, small C)
        x = x.astype(io_dtype)
    weights = prepare_kernel_params(params)

    kernel = functools.partial(_linear_attn_ffn_kernel, n_per_patch=N, p_blk=p_blk,
                               ffn_chunk=ffn_chunk)

    x_spec = pl.BlockSpec((None, C, T_blk), lambda b, pb: (b, 0, pb))
    out_spec = pl.BlockSpec((None, C, T_blk), lambda b, pb: (b, 0, pb))

    def wspec(arr, mode):
        nd = arr.ndim
        idx = lambda b, pb, _nd=nd: (0,) * _nd       # constant index map: DMA'd once
        if mode is None:
            return pl.BlockSpec(arr.shape, idx)
        return pl.BlockSpec(arr.shape, idx, pipeline_mode=mode)

    # Advisory cost model for XLA's scheduler around the custom call.
    flops = 2 * B * T * C * ((2 * C + _Q_PAD) + C + 2 * F)
    trans = B * T * (F + 2)                # sigmoid on (F,T), exp on (1,T), recips
    bytes_accessed = (2 * B * C * T * x.dtype.itemsize
                      + sum(int(w.size) * w.dtype.itemsize for w in weights))
    ce = pl.CostEstimate(flops=int(flops), transcendentals=int(trans),
                         bytes_accessed=int(bytes_accessed))

    def run(weight_mode):
        return pl.pallas_call(
            kernel,
            out_shape=jax.ShapeDtypeStruct((B, C, T), x.dtype),
            grid=(B, P // p_blk),
            in_specs=[x_spec] + [wspec(w, weight_mode) for w in weights],
            out_specs=out_spec,
            scratch_shapes=[pltpu.VMEM((C, T_blk), jnp.float32)],
            compiler_params=pltpu.CompilerParams(
                dimension_semantics=("parallel", "parallel"),
                vmem_limit_bytes=vmem_limit_bytes),
            cost_estimate=ce,
        )(x, *weights)

    if weight_buffers is None:
        out = run(None)
    else:
        try:
            # Constant-index weights only need a single VMEM buffer (halves their
            # footprint -- the freed VMEM goes into a larger activation tile).
            out = run(pl.Buffered(weight_buffers))
        except Exception:
            # This JAX build does not accept BlockSpec.pipeline_mode: fall back to
            # the default double-buffered weights (correctness is identical).
            out = run(None)

    return out.reshape(B, C, P, N).astype(x_nchw.dtype)


def reference(x, p, *, matmul_dtype=None, eps=1e-5):
    """Pure-JAX eval-mode LinearAttnFFN on NCHW (B, C, P, N).

    matmul_dtype=jnp.bfloat16 mirrors the kernel's mixed-precision policy (bf16
    matmul operands incl. the fused q row, f32 accumulation); None is pure f32."""
    def mm(w, a):          # 1x1 conv over channels
        if matmul_dtype is not None:
            w = w.astype(matmul_dtype)
            a = a.astype(matmul_dtype)
        return jnp.einsum("oc,bcpn->bopn", w, a, preferred_element_type=jnp.float32)

    def cb(vec):           # per-channel broadcast
        return vec[None, :, None, None]

    s1 = p["bn1_gamma"] / jnp.sqrt(p["bn1_var"] + eps)
    xn = x * cb(s1) + cb(p["bn1_beta"] - p["bn1_mean"] * s1)
    q = mm(p["wq"], xn) + p["bq"][0]
    k = mm(p["wk"], xn) + cb(p["bk"])
    v = mm(p["wv"], xn) + cb(p["bv"])
    scores = jax.nn.softmax(q, axis=-1)                           # over patches N
    ctx = jnp.sum(k * scores, axis=-1, keepdims=True)
    attn = jax.nn.relu(v) * ctx
    o = mm(p["wo"], attn) + cb(p["bo"])
    x1 = x + o
    s2 = p["bn2_gamma"] / jnp.sqrt(p["bn2_var"] + eps)
    xn2 = x1 * cb(s2) + cb(p["bn2_beta"] - p["bn2_mean"] * s2)
    h = mm(p["w1"], xn2) + cb(p["b1"])
    h = h * jax.nn.sigmoid(h)
    f = mm(p["w2"], h) + cb(p["b2"])
    return x1 + f


def make_params(key, C, F):
    ks = jax.random.split(key, 16)

    def init(k, shape, scale=0.2):
        return scale * jax.random.normal(k, shape, dtype=jnp.float32)

    ar = jnp.arange(C, dtype=jnp.float32)
    return {
        "bn1_gamma": 1.0 + 0.1 * jnp.sin(ar),
        "bn1_beta": 0.05 * jnp.cos(ar),
        "bn1_mean": init(ks[0], (C,), 0.1),
        "bn1_var": jnp.abs(init(ks[1], (C,), 0.3)) + 1.0,
        "wq": init(ks[2], (1, C)), "bq": init(ks[3], (1,)),
        "wk": init(ks[4], (C, C)), "bk": init(ks[5], (C,)),
        "wv": init(ks[6], (C, C)), "bv": init(ks[7], (C,)),
        "wo": init(ks[8], (C, C)), "bo": init(ks[9], (C,)),
        "bn2_gamma": 1.0 - 0.05 * jnp.sin(ar),
        "bn2_beta": -0.03 * jnp.cos(ar),
        "bn2_mean": init(ks[10], (C,), 0.1),
        "bn2_var": jnp.abs(init(ks[11], (C,), 0.3)) + 1.0,
        "w1": init(ks[12], (F, C)), "b1": init(ks[13], (F,)),
        "w2": init(ks[14], (C, F)), "b2": init(ks[15], (C,)),
    }


if __name__ == "__main__":
    def check(B, C, P, N, F, **kw):
        key = jax.random.PRNGKey(0)
        kx, kp = jax.random.split(key)
        x = jax.random.normal(kx, (B, C, P, N), dtype=jnp.float32)
        params = make_params(kp, C, F)

        out = jax.block_until_ready(linear_attn_ffn(x, params, **kw))
        assert out.shape == (B, C, P, N) and out.dtype == jnp.float32

        # Tight check vs a reference with the kernel's mixed-precision policy
        # (bf16 matmul operands, f32 accumulation); loose vs the pure-f32 module.
        ref_mixed = jax.block_until_ready(reference(x, params, matmul_dtype=jnp.bfloat16))
        ref_f32 = jax.block_until_ready(reference(x, params))
        err_mixed = float(jnp.max(jnp.abs(out - ref_mixed)))
        err_f32 = float(jnp.max(jnp.abs(out - ref_f32)))
        assert jnp.allclose(out, ref_mixed, atol=2e-2, rtol=2e-2), \
            f"mixed ref diff {err_mixed} at {(B, C, P, N, F)}"
        assert jnp.allclose(out, ref_f32, atol=2e-1, rtol=2e-1), \
            f"f32 ref diff {err_f32} at {(B, C, P, N, F)}"

    # 1) Small shapes from the module spec (T = P*N = 64 -> whole-extent token block).
    check(B=2, C=8, P=4, N=16, F=16)
    # 2) 128-aligned patch count: exercises the multi-step grid, lane-tile-aligned
    #    patch segments, and the chunked (fori_loop) FFN path.
    check(B=2, C=16, P=4, N=128, F=32, p_blk=2, ffn_chunk=128)

    print("KERNEL_OK")
</pallas_src>

<mosaic_0001>
module attributes {stable_mosaic.version = 11 : i64} {
  func.func @_linear_attn_ffn_kernel(%arg0: i32, %arg1: i32, %arg2: memref<1x8x64xf32, #tpu.memory_space<vmem>>, %arg3: memref<24x8xbf16, #tpu.memory_space<vmem>>, %arg4: memref<24x1xf32, #tpu.memory_space<vmem>>, %arg5: memref<8x8xbf16, #tpu.memory_space<vmem>>, %arg6: memref<16x8xbf16, #tpu.memory_space<vmem>>, %arg7: memref<16x1xf32, #tpu.memory_space<vmem>>, %arg8: memref<8x16xbf16, #tpu.memory_space<vmem>>, %arg9: memref<8x6xf32, #tpu.memory_space<vmem>>, %arg10: memref<1x8x64xf32, #tpu.memory_space<vmem>>, %arg11: memref<8x64xf32, #tpu.memory_space<vmem>>) attributes {dimension_semantics = [#tpu.dimension_semantics<parallel>, #tpu.dimension_semantics<parallel>], iteration_bounds = array<i64: 2, 1>, scalar_prefetch = 0 : i64, scratch_operands = 1 : i64, tpu.core_type = #tpu.core_type<tc>, window_params = [{transform_indices = @transform_0, window_bounds = array<i64: 1, 8, 64>}, {pipeline_mode = #tpu.pipeline_mode<synchronous>, transform_indices = @transform_1, window_bounds = array<i64: 24, 8>}, {pipeline_mode = #tpu.pipeline_mode<synchronous>, transform_indices = @transform_2, window_bounds = array<i64: 24, 1>}, {pipeline_mode = #tpu.pipeline_mode<synchronous>, transform_indices = @transform_3, window_bounds = array<i64: 8, 8>}, {pipeline_mode = #tpu.pipeline_mode<synchronous>, transform_indices = @transform_4, window_bounds = array<i64: 16, 8>}, {pipeline_mode = #tpu.pipeline_mode<synchronous>, transform_indices = @transform_5, window_bounds = array<i64: 16, 1>}, {pipeline_mode = #tpu.pipeline_mode<synchronous>, transform_indices = @transform_6, window_bounds = array<i64: 8, 16>}, {pipeline_mode = #tpu.pipeline_mode<synchronous>, transform_indices = @transform_7, window_bounds = array<i64: 8, 6>}, {transform_indices = @transform_8, window_bounds = array<i64: 1, 8, 64>}]} {
    %c0 = arith.constant 0 : index
    %c0_0 = arith.constant 0 : index
    %c0_1 = arith.constant 0 : index
    %0 = vector.load %arg2[%c0, %c0_0, %c0_1] : memref<1x8x64xf32, #tpu.memory_space<vmem>>, vector<1x8x64xf32>
    %1 = vector.shape_cast %0 : vector<1x8x64xf32> to vector<8x64xf32>
    %c0_2 = arith.constant 0 : index
    %c0_3 = arith.constant 0 : index
    %2 = vector.load %arg9[%c0_2, %c0_3] : memref<8x6xf32, #tpu.memory_space<vmem>>, vector<8x6xf32>
    %3 = vector.extract_strided_slice %2 {offsets = [0, 0], sizes = [8, 1], strides = [1, 1]} : vector<8x6xf32> to vector<8x1xf32>
    %4 = vector.extract_strided_slice %2 {offsets = [0, 1], sizes = [8, 1], strides = [1, 1]} : vector<8x6xf32> to vector<8x1xf32>
    %5 = vector.extract_strided_slice %2 {offsets = [0, 2], sizes = [8, 1], strides = [1, 1]} : vector<8x6xf32> to vector<8x1xf32>
    %6 = vector.extract_strided_slice %2 {offsets = [0, 3], sizes = [8, 1], strides = [1, 1]} : vector<8x6xf32> to vector<8x1xf32>
    %7 = vector.extract_strided_slice %2 {offsets = [0, 4], sizes = [8, 1], strides = [1, 1]} : vector<8x6xf32> to vector<8x1xf32>
    %8 = vector.extract_strided_slice %2 {offsets = [0, 5], sizes = [8, 1], strides = [1, 1]} : vector<8x6xf32> to vector<8x1xf32>
    %9 = vector.broadcast %3 : vector<8x1xf32> to vector<8x64xf32>
    %10 = arith.mulf %1, %9 : vector<8x64xf32>
    %11 = vector.broadcast %4 : vector<8x1xf32> to vector<8x64xf32>
    %12 = arith.addf %10, %11 : vector<8x64xf32>
    %c0_4 = arith.constant 0 : index
    %c0_5 = arith.constant 0 : index
    %13 = vector.load %arg3[%c0_4, %c0_5] : memref<24x8xbf16, #tpu.memory_space<vmem>>, vector<24x8xbf16>
    %14 = arith.truncf %12 : vector<8x64xf32> to vector<8x64xbf16>
    %cst = arith.constant dense<0.000000e+00> : vector<24x64xf32>
    %15 = tpu.matmul %13, %14, %cst {dimension_numbers = #tpu.dot_dimension_numbers<[1], [0], [0], [1], [0, 0, 1, 1], [], []>} : vector<24x8xbf16>, vector<8x64xbf16>, vector<24x64xf32> -> vector<24x64xf32>
    %c0_6 = arith.constant 0 : index
    %c0_7 = arith.constant 0 : index
    %16 = vector.load %arg4[%c0_6, %c0_7] : memref<24x1xf32, #tpu.memory_space<vmem>>, vector<24x1xf32>
    %17 = vector.broadcast %16 : vector<24x1xf32> to vector<24x64xf32>
    %18 = arith.addf %15, %17 : vector<24x64xf32>
    %19 = vector.extract_strided_slice %18 {offsets = [0, 0], sizes = [8, 64], strides = [1, 1]} : vector<24x64xf32> to vector<8x64xf32>
    %20 = vector.extract_strided_slice %18 {offsets = [8, 0], sizes = [8, 64], strides = [1, 1]} : vector<24x64xf32> to vector<8x64xf32>
    %21 = vector.extract_strided_slice %18 {offsets = [16, 0], sizes = [1, 64], strides = [1, 1]} : vector<24x64xf32> to vector<1x64xf32>
    %22 = vector.extract_strided_slice %21 {offsets = [0, 0], sizes = [1, 16], strides = [1, 1]} : vector<1x64xf32> to vector<1x16xf32>
    %cst_8 = arith.constant dense<0xFF800000> : vector<1xf32>
    %23 = vector.multi_reduction <maximumf>, %22, %cst_8 [1] : vector<1x16xf32> to vector<1xf32>
    %24 = vector.shape_cast %23 : vector<1xf32> to vector<1x1xf32>
    %25 = vector.broadcast %24 : vector<1x1xf32> to vector<1x16xf32>
    %26 = arith.subf %22, %25 : vector<1x16xf32>
    %27 = math.exp %26 : vector<1x16xf32>
    %cst_9 = arith.constant dense<0.000000e+00> : vector<1xf32>
    %28 = vector.multi_reduction <add>, %27, %cst_9 [1] : vector<1x16xf32> to vector<1xf32>
    %29 = vector.shape_cast %28 : vector<1xf32> to vector<1x1xf32>
    %30 = tpu.reciprocal %29 {approx = true} : vector<1x1xf32> -> vector<1x1xf32>
    %31 = vector.broadcast %30 : vector<1x1xf32> to vector<1x16xf32>
    %32 = arith.mulf %27, %31 : vector<1x16xf32>
    %33 = vector.extract_strided_slice %19 {offsets = [0, 0], sizes = [8, 16], strides = [1, 1]} : vector<8x64xf32> to vector<8x16xf32>
    %34 = vector.broadcast %32 : vector<1x16xf32> to vector<8x16xf32>
    %35 = arith.mulf %33, %34 : vector<8x16xf32>
    %cst_10 = arith.constant dense<0.000000e+00> : vector<8xf32>
    %36 = vector.multi_reduction <add>, %35, %cst_10 [1] : vector<8x16xf32> to vector<8xf32>
    %37 = vector.shape_cast %36 : vector<8xf32> to vector<8x1xf32>
    %38 = vector.extract_strided_slice %20 {offsets = [0, 0], sizes = [8, 16], strides = [1, 1]} : vector<8x64xf32> to vector<8x16xf32>
    %cst_11 = arith.constant 0.000000e+00 : f32
    %39 = vector.broadcast %cst_11 : f32 to vector<8x16xf32>
    %40 = arith.maximumf %38, %39 : vector<8x16xf32>
    %41 = vector.broadcast %37 : vector<8x1xf32> to vector<8x16xf32>
    %42 = arith.mulf %40, %41 : vector<8x16xf32>
    %c0_12 = arith.constant 0 : index
    %c0_13 = arith.constant 0 : index
    %43 = vector.load %arg11[%c0_12, %c0_13] : memref<8x64xf32, #tpu.memory_space<vmem>>, vector<8x16xf32>
    tpu.vector_store %arg11[%c0_12, %c0_13], %42 {strides = array<i32>} : memref<8x64xf32, #tpu.memory_space<vmem>>, vector<8x16xf32>,
    %44 = vector.extract_strided_slice %21 {offsets = [0, 16], sizes = [1, 16], strides = [1, 1]} : vector<1x64xf32> to vector<1x16xf32>
    %cst_14 = arith.constant dense<0xFF800000> : vector<1xf32>
    %45 = vector.multi_reduction <maximumf>, %44, %cst_14 [1] : vector<1x16xf32> to vector<1xf32>
    %46 = vector.shape_cast %45 : vector<1xf32> to vector<1x1xf32>
    %47 = vector.broadcast %46 : vector<1x1xf32> to vector<1x16xf32>
    %48 = arith.subf %44, %47 : vector<1x16xf32>
    %49 = math.exp %48 : vector<1x16xf32>
    %cst_15 = arith.constant dense<0.000000e+00> : vector<1xf32>
    %50 = vector.multi_reduction <add>, %49, %cst_15 [1] : vector<1x16xf32> to vector<1xf32>
    %51 = vector.shape_cast %50 : vector<1xf32> to vector<1x1xf32>
    %52 = tpu.reciprocal %51 {approx = true} : vector<1x1xf32> -> vector<1x1xf32>
    %53 = vector.broadcast %52 : vector<1x1xf32> to vector<1x16xf32>
    %54 = arith.mulf %49, %53 : vector<1x16xf32>
    %55 = vector.extract_strided_slice %19 {offsets = [0, 16], sizes = [8, 16], strides = [1, 1]} : vector<8x64xf32> to vector<8x16xf32>
    %56 = vector.broadcast %54 : vector<1x16xf32> to vector<8x16xf32>
    %57 = arith.mulf %55, %56 : vector<8x16xf32>
    %cst_16 = arith.constant dense<0.000000e+00> : vector<8xf32>
    %58 = vector.multi_reduction <add>, %57, %cst_16 [1] : vector<8x16xf32> to vector<8xf32>
    %59 = vector.shape_cast %58 : vector<8xf32> to vector<8x1xf32>
    %60 = vector.extract_strided_slice %20 {offsets = [0, 16], sizes = [8, 16], strides = [1, 1]} : vector<8x64xf32> to vector<8x16xf32>
    %cst_17 = arith.constant 0.000000e+00 : f32
    %61 = vector.broadcast %cst_17 : f32 to vector<8x16xf32>
    %62 = arith.maximumf %60, %61 : vector<8x16xf32>
    %63 = vector.broadcast %59 : vector<8x1xf32> to vector<8x16xf32>
    %64 = arith.mulf %62, %63 : vector<8x16xf32>
    %c0_18 = arith.constant 0 : index
    %c16 = arith.constant 16 : index
    %65 = vector.load %arg11[%c0_18, %c16] : memref<8x64xf32, #tpu.memory_space<vmem>>, vector<8x16xf32>
    tpu.vector_store %arg11[%c0_18, %c16], %64 {strides = array<i32>} : memref<8x64xf32, #tpu.memory_space<vmem>>, vector<8x16xf32>,
    %66 = vector.extract_strided_slice %21 {offsets = [0, 32], sizes = [1, 16], strides = [1, 1]} : vector<1x64xf32> to vector<1x16xf32>
    %cst_19 = arith.constant dense<0xFF800000> : vector<1xf32>
    %67 = vector.multi_reduction <maximumf>, %66, %cst_19 [1] : vector<1x16xf32> to vector<1xf32>
    %68 = vector.shape_cast %67 : vector<1xf32> to vector<1x1xf32>
    %69 = vector.broadcast %68 : vector<1x1xf32> to vector<1x16xf32>
    %70 = arith.subf %66, %69 : vector<1x16xf32>
    %71 = math.exp %70 : vector<1x16xf32>
    %cst_20 = arith.constant dense<0.000000e+00> : vector<1xf32>
    %72 = vector.multi_reduction <add>, %71, %cst_20 [1] : vector<1x16xf32> to vector<1xf32>
    %73 = vector.shape_cast %72 : vector<1xf32> to vector<1x1xf32>
    %74 = tpu.reciprocal %73 {approx = true} : vector<1x1xf32> -> vector<1x1xf32>
    %75 = vector.broadcast %74 : vector<1x1xf32> to vector<1x16xf32>
    %76 = arith.mulf %71, %75 : vector<1x16xf32>
    %77 = vector.extract_strided_slice %19 {offsets = [0, 32], sizes = [8, 16], strides = [1, 1]} : vector<8x64xf32> to vector<8x16xf32>
    %78 = vector.broadcast %76 : vector<1x16xf32> to vector<8x16xf32>
    %79 = arith.mulf %77, %78 : vector<8x16xf32>
    %cst_21 = arith.constant dense<0.000000e+00> : vector<8xf32>
    %80 = vector.multi_reduction <add>, %79, %cst_21 [1] : vector<8x16xf32> to vector<8xf32>
    %81 = vector.shape_cast %80 : vector<8xf32> to vector<8x1xf32>
    %82 = vector.extract_strided_slice %20 {offsets = [0, 32], sizes = [8, 16], strides = [1, 1]} : vector<8x64xf32> to vector<8x16xf32>
    %cst_22 = arith.constant 0.000000e+00 : f32
    %83 = vector.broadcast %cst_22 : f32 to vector<8x16xf32>
    %84 = arith.maximumf %82, %83 : vector<8x16xf32>
    %85 = vector.broadcast %81 : vector<8x1xf32> to vector<8x16xf32>
    %86 = arith.mulf %84, %85 : vector<8x16xf32>
    %c0_23 = arith.constant 0 : index
    %c32 = arith.constant 32 : index
    %87 = vector.load %arg11[%c0_23, %c32] : memref<8x64xf32, #tpu.memory_space<vmem>>, vector<8x16xf32>
    tpu.vector_store %arg11[%c0_23, %c32], %86 {strides = array<i32>} : memref<8x64xf32, #tpu.memory_space<vmem>>, vector<8x16xf32>,
    %88 = vector.extract_strided_slice %21 {offsets = [0, 48], sizes = [1, 16], strides = [1, 1]} : vector<1x64xf32> to vector<1x16xf32>
    %cst_24 = arith.constant dense<0xFF800000> : vector<1xf32>
    %89 = vector.multi_reduction <maximumf>, %88, %cst_24 [1] : vector<1x16xf32> to vector<1xf32>
    %90 = vector.shape_cast %89 : vector<1xf32> to vector<1x1xf32>
    %91 = vector.broadcast %90 : vector<1x1xf32> to vector<1x16xf32>
    %92 = arith.subf %88, %91 : vector<1x16xf32>
    %93 = math.exp %92 : vector<1x16xf32>
    %cst_25 = arith.constant dense<0.000000e+00> : vector<1xf32>
    %94 = vector.multi_reduction <add>, %93, %cst_25 [1] : vector<1x16xf32> to vector<1xf32>
    %95 = vector.shape_cast %94 : vector<1xf32> to vector<1x1xf32>
    %96 = tpu.reciprocal %95 {approx = true} : vector<1x1xf32> -> vector<1x1xf32>
    %97 = vector.broadcast %96 : vector<1x1xf32> to vector<1x16xf32>
    %98 = arith.mulf %93, %97 : vector<1x16xf32>
    %99 = vector.extract_strided_slice %19 {offsets = [0, 48], sizes = [8, 16], strides = [1, 1]} : vector<8x64xf32> to vector<8x16xf32>
    %100 = vector.broadcast %98 : vector<1x16xf32> to vector<8x16xf32>
    %101 = arith.mulf %99, %100 : vector<8x16xf32>
    %cst_26 = arith.constant dense<0.000000e+00> : vector<8xf32>
    %102 = vector.multi_reduction <add>, %101, %cst_26 [1] : vector<8x16xf32> to vector<8xf32>
    %103 = vector.shape_cast %102 : vector<8xf32> to vector<8x1xf32>
    %104 = vector.extract_strided_slice %20 {offsets = [0, 48], sizes = [8, 16], strides = [1, 1]} : vector<8x64xf32> to vector<8x16xf32>
    %cst_27 = arith.constant 0.000000e+00 : f32
    %105 = vector.broadcast %cst_27 : f32 to vector<8x16xf32>
    %106 = arith.maximumf %104, %105 : vector<8x16xf32>
    %107 = vector.broadcast %103 : vector<8x1xf32> to vector<8x16xf32>
    %108 = arith.mulf %106, %107 : vector<8x16xf32>
    %c0_28 = arith.constant 0 : index
    %c48 = arith.constant 48 : index
    %109 = vector.load %arg11[%c0_28, %c48] : memref<8x64xf32, #tpu.memory_space<vmem>>, vector<8x16xf32>
    tpu.vector_store %arg11[%c0_28, %c48], %108 {strides = array<i32>} : memref<8x64xf32, #tpu.memory_space<vmem>>, vector<8x16xf32>,
    %c0_29 = arith.constant 0 : index
    %c0_30 = arith.constant 0 : index
    %110 = vector.load %arg5[%c0_29, %c0_30] : memref<8x8xbf16, #tpu.memory_space<vmem>>, vector<8x8xbf16>
    %c0_31 = arith.constant 0 : index
    %c0_32 = arith.constant 0 : index
    %111 = vector.load %arg11[%c0_31, %c0_32] : memref<8x64xf32, #tpu.memory_space<vmem>>, vector<8x64xf32>
    %112 = arith.truncf %111 : vector<8x64xf32> to vector<8x64xbf16>
    %cst_33 = arith.constant dense<0.000000e+00> : vector<8x64xf32>
    %113 = tpu.matmul %110, %112, %cst_33 {dimension_numbers = #tpu.dot_dimension_numbers<[1], [0], [0], [1], [0, 0, 1, 1], [], []>} : vector<8x8xbf16>, vector<8x64xbf16>, vector<8x64xf32> -> vector<8x64xf32>
    %114 = vector.broadcast %7 : vector<8x1xf32> to vector<8x64xf32>
    %115 = arith.addf %113, %114 : vector<8x64xf32>
    %116 = arith.addf %1, %115 : vector<8x64xf32>
    %c0_34 = arith.constant 0 : index
    %c0_35 = arith.constant 0 : index
    %117 = vector.load %arg11[%c0_34, %c0_35] : memref<8x64xf32, #tpu.memory_space<vmem>>, vector<8x64xf32>
    tpu.vector_store %arg11[%c0_34, %c0_35], %116 {strides = array<i32>} : memref<8x64xf32, #tpu.memory_space<vmem>>, vector<8x64xf32>,
    %c0_36 = arith.constant 0 : index
    %c0_37 = arith.constant 0 : index
    %118 = vector.load %arg11[%c0_36, %c0_37] : memref<8x64xf32, #tpu.memory_space<vmem>>, vector<8x64xf32>
    %119 = vector.broadcast %5 : vector<8x1xf32> to vector<8x64xf32>
    %120 = arith.mulf %118, %119 : vector<8x64xf32>
    %121 = vector.broadcast %6 : vector<8x1xf32> to vector<8x64xf32>
    %122 = arith.addf %120, %121 : vector<8x64xf32>
    %c0_38 = arith.constant 0 : index
    %c0_39 = arith.constant 0 : index
    %123 = vector.load %arg6[%c0_38, %c0_39] : memref<16x8xbf16, #tpu.memory_space<vmem>>, vector<16x8xbf16>
    %124 = arith.truncf %122 : vector<8x64xf32> to vector<8x64xbf16>
    %cst_40 = arith.constant dense<0.000000e+00> : vector<16x64xf32>
    %125 = tpu.matmul %123, %124, %cst_40 {dimension_numbers = #tpu.dot_dimension_numbers<[1], [0], [0], [1], [0, 0, 1, 1], [], []>} : vector<16x8xbf16>, vector<8x64xbf16>, vector<16x64xf32> -> vector<16x64xf32>
    %c0_41 = arith.constant 0 : index
    %c0_42 = arith.constant 0 : index
    %126 = vector.load %arg7[%c0_41, %c0_42] : memref<16x1xf32, #tpu.memory_space<vmem>>, vector<16x1xf32>
    %127 = vector.broadcast %126 : vector<16x1xf32> to vector<16x64xf32>
    %128 = arith.addf %125, %127 : vector<16x64xf32>
    %129 = arith.negf %128 : vector<16x64xf32>
    %130 = math.exp %129 : vector<16x64xf32>
    %cst_43 = arith.constant 1.000000e+00 : f32
    %131 = vector.broadcast %cst_43 : f32 to vector<16x64xf32>
    %132 = arith.addf %131, %130 : vector<16x64xf32>
    %133 = arith.divf %131, %132 : vector<16x64xf32>
    %134 = arith.mulf %128, %133 : vector<16x64xf32>
    %c0_44 = arith.constant 0 : index
    %c0_45 = arith.constant 0 : index
    %135 = vector.load %arg8[%c0_44, %c0_45] : memref<8x16xbf16, #tpu.memory_space<vmem>>, vector<8x16xbf16>
    %136 = arith.truncf %134 : vector<16x64xf32> to vector<16x64xbf16>
    %cst_46 = arith.constant dense<0.000000e+00> : vector<8x64xf32>
    %137 = tpu.matmul %135, %136, %cst_46 {dimension_numbers = #tpu.dot_dimension_numbers<[1], [0], [0], [1], [0, 0, 1, 1], [], []>} : vector<8x16xbf16>, vector<16x64xbf16>, vector<8x64xf32> -> vector<8x64xf32>
    %138 = vector.broadcast %8 : vector<8x1xf32> to vector<8x64xf32>
    %139 = arith.addf %137, %138 : vector<8x64xf32>
    %140 = arith.addf %118, %139 : vector<8x64xf32>
    %c0_47 = arith.constant 0 : index
    %c0_48 = arith.constant 0 : index
    %c0_49 = arith.constant 0 : index
    %141 = vector.load %arg10[%c0_47, %c0_48, %c0_49] : memref<1x8x64xf32, #tpu.memory_space<vmem>>, vector<1x8x64xf32>
    %142 = vector.shape_cast %141 : vector<1x8x64xf32> to vector<8x64xf32>
    %143 = vector.shape_cast %140 : vector<8x64xf32> to vector<1x8x64xf32>
    tpu.vector_store %arg10[%c0_47, %c0_48, %c0_49], %143 {strides = array<i32>} : memref<1x8x64xf32, #tpu.memory_space<vmem>>, vector<1x8x64xf32>,
    return
  }
  func.func @transform_0(%arg0: i32, %arg1: i32) -> (i32, i32, i32) {
    %c0_i32 = arith.constant 0 : i32
    %c0_i32_0 = arith.constant 0 : i32
    return %arg0, %c0_i32, %arg1 : i32, i32, i32
  }
  func.func @transform_1(%arg0: i32, %arg1: i32) -> (i32, i32) {
    %c0_i32 = arith.constant 0 : i32
    %c0_i32_0 = arith.constant 0 : i32
    %c0_i32_1 = arith.constant 0 : i32
    return %c0_i32, %c0_i32_0 : i32, i32
  }
  func.func @transform_2(%arg0: i32, %arg1: i32) -> (i32, i32) {
    %c0_i32 = arith.constant 0 : i32
    %c0_i32_0 = arith.constant 0 : i32
    %c0_i32_1 = arith.constant 0 : i32
    return %c0_i32, %c0_i32_0 : i32, i32
  }
  func.func @transform_3(%arg0: i32, %arg1: i32) -> (i32, i32) {
    %c0_i32 = arith.constant 0 : i32
    %c0_i32_0 = arith.constant 0 : i32
    %c0_i32_1 = arith.constant 0 : i32
    return %c0_i32, %c0_i32_0 : i32, i32
  }
  func.func @transform_4(%arg0: i32, %arg1: i32) -> (i32, i32) {
    %c0_i32 = arith.constant 0 : i32
    %c0_i32_0 = arith.constant 0 : i32
    %c0_i32_1 = arith.constant 0 : i32
    return %c0_i32, %c0_i32_0 : i32, i32
  }
  func.func @transform_5(%arg0: i32, %arg1: i32) -> (i32, i32) {
    %c0_i32 = arith.constant 0 : i32
    %c0_i32_0 = arith.constant 0 : i32
    %c0_i32_1 = arith.constant 0 : i32
    return %c0_i32, %c0_i32_0 : i32, i32
  }
  func.func @transform_6(%arg0: i32, %arg1: i32) -> (i32, i32) {
    %c0_i32 = arith.constant 0 : i32
    %c0_i32_0 = arith.constant 0 : i32
    %c0_i32_1 = arith.constant 0 : i32
    return %c0_i32, %c0_i32_0 : i32, i32
  }
  func.func @transform_7(%arg0: i32, %arg1: i32) -> (i32, i32) {
    %c0_i32 = arith.constant 0 : i32
    %c0_i32_0 = arith.constant 0 : i32
    %c0_i32_1 = arith.constant 0 : i32
    return %c0_i32, %c0_i32_0 : i32, i32
  }
  func.func @transform_8(%arg0: i32, %arg1: i32) -> (i32, i32, i32) {
    %c0_i32 = arith.constant 0 : i32
    %c0_i32_0 = arith.constant 0 : i32
    return %arg0, %c0_i32, %arg1 : i32, i32, i32
  }
}

module attributes {stable_mosaic.version = 11 : i64} {
  func.func @_linear_attn_ffn_kernel(%arg0: i32, %arg1: i32, %arg2: memref<1x8x64xf32, #tpu.memory_space<vmem>>, %arg3: memref<24x8xbf16, #tpu.memory_space<vmem>>, %arg4: memref<24x1xf32, #tpu.memory_space<vmem>>, %arg5: memref<8x8xbf16, #tpu.memory_space<vmem>>, %arg6: memref<16x8xbf16, #tpu.memory_space<vmem>>, %arg7: memref<16x1xf32, #tpu.memory_space<vmem>>, %arg8: memref<8x16xbf16, #tpu.memory_space<vmem>>, %arg9: memref<8x6xf32, #tpu.memory_space<vmem>>, %arg10: memref<1x8x64xf32, #tpu.memory_space<vmem>>, %arg11: memref<8x64xf32, #tpu.memory_space<vmem>>) attributes {dimension_semantics = [#tpu.dimension_semantics<parallel>, #tpu.dimension_semantics<parallel>], iteration_bounds = array<i64: 2, 1>, scalar_prefetch = 0 : i64, scratch_operands = 1 : i64, tpu.core_type = #tpu.core_type<tc>, window_params = [{transform_indices = @transform_0, window_bounds = array<i64: 1, 8, 64>}, {pipeline_mode = #tpu.pipeline_mode<synchronous>, transform_indices = @transform_1, window_bounds = array<i64: 24, 8>}, {pipeline_mode = #tpu.pipeline_mode<synchronous>, transform_indices = @transform_2, window_bounds = array<i64: 24, 1>}, {pipeline_mode = #tpu.pipeline_mode<synchronous>, transform_indices = @transform_3, window_bounds = array<i64: 8, 8>}, {pipeline_mode = #tpu.pipeline_mode<synchronous>, transform_indices = @transform_4, window_bounds = array<i64: 16, 8>}, {pipeline_mode = #tpu.pipeline_mode<synchronous>, transform_indices = @transform_5, window_bounds = array<i64: 16, 1>}, {pipeline_mode = #tpu.pipeline_mode<synchronous>, transform_indices = @transform_6, window_bounds = array<i64: 8, 16>}, {pipeline_mode = #tpu.pipeline_mode<synchronous>, transform_indices = @transform_7, window_bounds = array<i64: 8, 6>}, {transform_indices = @transform_8, window_bounds = array<i64: 1, 8, 64>}]} {
    %c0 = arith.constant 0 : index
    %c0_0 = arith.constant 0 : index
    %c0_1 = arith.constant 0 : index
    %0 = vector.load %arg2[%c0, %c0_0, %c0_1] : memref<1x8x64xf32, #tpu.memory_space<vmem>>, vector<1x8x64xf32>
    %1 = vector.shape_cast %0 : vector<1x8x64xf32> to vector<8x64xf32>
    %c0_2 = arith.constant 0 : index
    %c0_3 = arith.constant 0 : index
    %2 = vector.load %arg9[%c0_2, %c0_3] : memref<8x6xf32, #tpu.memory_space<vmem>>, vector<8x6xf32>
    %3 = vector.extract_strided_slice %2 {offsets = [0, 0], sizes = [8, 1], strides = [1, 1]} : vector<8x6xf32> to vector<8x1xf32>
    %4 = vector.extract_strided_slice %2 {offsets = [0, 1], sizes = [8, 1], strides = [1, 1]} : vector<8x6xf32> to vector<8x1xf32>
    %5 = vector.extract_strided_slice %2 {offsets = [0, 2], sizes = [8, 1], strides = [1, 1]} : vector<8x6xf32> to vector<8x1xf32>
    %6 = vector.extract_strided_slice %2 {offsets = [0, 3], sizes = [8, 1], strides = [1, 1]} : vector<8x6xf32> to vector<8x1xf32>
    %7 = vector.extract_strided_slice %2 {offsets = [0, 4], sizes = [8, 1], strides = [1, 1]} : vector<8x6xf32> to vector<8x1xf32>
    %8 = vector.extract_strided_slice %2 {offsets = [0, 5], sizes = [8, 1], strides = [1, 1]} : vector<8x6xf32> to vector<8x1xf32>
    %9 = vector.broadcast %3 : vector<8x1xf32> to vector<8x64xf32>
    %10 = arith.mulf %1, %9 : vector<8x64xf32>
    %11 = vector.broadcast %4 : vector<8x1xf32> to vector<8x64xf32>
    %12 = arith.addf %10, %11 : vector<8x64xf32>
    %c0_4 = arith.constant 0 : index
    %c0_5 = arith.constant 0 : index
    %13 = vector.load %arg3[%c0_4, %c0_5] : memref<24x8xbf16, #tpu.memory_space<vmem>>, vector<24x8xbf16>
    %14 = arith.truncf %12 : vector<8x64xf32> to vector<8x64xbf16>
    %cst = arith.constant dense<0.000000e+00> : vector<24x64xf32>
    %15 = tpu.matmul %13, %14, %cst {dimension_numbers = #tpu.dot_dimension_numbers<[1], [0], [0], [1], [0, 0, 1, 1], [], []>} : vector<24x8xbf16>, vector<8x64xbf16>, vector<24x64xf32> -> vector<24x64xf32>
    %c0_6 = arith.constant 0 : index
    %c0_7 = arith.constant 0 : index
    %16 = vector.load %arg4[%c0_6, %c0_7] : memref<24x1xf32, #tpu.memory_space<vmem>>, vector<24x1xf32>
    %17 = vector.broadcast %16 : vector<24x1xf32> to vector<24x64xf32>
    %18 = arith.addf %15, %17 : vector<24x64xf32>
    %19 = vector.extract_strided_slice %18 {offsets = [0, 0], sizes = [8, 64], strides = [1, 1]} : vector<24x64xf32> to vector<8x64xf32>
    %20 = vector.extract_strided_slice %18 {offsets = [8, 0], sizes = [8, 64], strides = [1, 1]} : vector<24x64xf32> to vector<8x64xf32>
    %21 = vector.extract_strided_slice %18 {offsets = [16, 0], sizes = [1, 64], strides = [1, 1]} : vector<24x64xf32> to vector<1x64xf32>
    %22 = vector.extract_strided_slice %21 {offsets = [0, 0], sizes = [1, 16], strides = [1, 1]} : vector<1x64xf32> to vector<1x16xf32>
    %cst_8 = arith.constant dense<0xFF800000> : vector<1xf32>
    %23 = vector.multi_reduction <maximumf>, %22, %cst_8 [1] : vector<1x16xf32> to vector<1xf32>
    %24 = vector.shape_cast %23 : vector<1xf32> to vector<1x1xf32>
    %25 = vector.broadcast %24 : vector<1x1xf32> to vector<1x16xf32>
    %26 = arith.subf %22, %25 : vector<1x16xf32>
    %27 = math.exp %26 : vector<1x16xf32>
    %cst_9 = arith.constant dense<0.000000e+00> : vector<1xf32>
    %28 = vector.multi_reduction <add>, %27, %cst_9 [1] : vector<1x16xf32> to vector<1xf32>
    %29 = vector.shape_cast %28 : vector<1xf32> to vector<1x1xf32>
    %30 = tpu.reciprocal %29 {approx = true} : vector<1x1xf32> -> vector<1x1xf32>
    %31 = vector.broadcast %30 : vector<1x1xf32> to vector<1x16xf32>
    %32 = arith.mulf %27, %31 : vector<1x16xf32>
    %33 = vector.extract_strided_slice %19 {offsets = [0, 0], sizes = [8, 16], strides = [1, 1]} : vector<8x64xf32> to vector<8x16xf32>
    %34 = vector.broadcast %32 : vector<1x16xf32> to vector<8x16xf32>
    %35 = arith.mulf %33, %34 : vector<8x16xf32>
    %cst_10 = arith.constant dense<0.000000e+00> : vector<8xf32>
    %36 = vector.multi_reduction <add>, %35, %cst_10 [1] : vector<8x16xf32> to vector<8xf32>
    %37 = vector.shape_cast %36 : vector<8xf32> to vector<8x1xf32>
    %38 = vector.extract_strided_slice %20 {offsets = [0, 0], sizes = [8, 16], strides = [1, 1]} : vector<8x64xf32> to vector<8x16xf32>
    %cst_11 = arith.constant 0.000000e+00 : f32
    %39 = vector.broadcast %cst_11 : f32 to vector<8x16xf32>
    %40 = arith.maximumf %38, %39 : vector<8x16xf32>
    %41 = vector.broadcast %37 : vector<8x1xf32> to vector<8x16xf32>
    %42 = arith.mulf %40, %41 : vector<8x16xf32>
    %c0_12 = arith.constant 0 : index
    %c0_13 = arith.constant 0 : index
    %43 = vector.load %arg11[%c0_12, %c0_13] : memref<8x64xf32, #tpu.memory_space<vmem>>, vector<8x16xf32>
    tpu.vector_store %arg11[%c0_12, %c0_13], %42 {strides = array<i32>} : memref<8x64xf32, #tpu.memory_space<vmem>>, vector<8x16xf32>,
    %44 = vector.extract_strided_slice %21 {offsets = [0, 16], sizes = [1, 16], strides = [1, 1]} : vector<1x64xf32> to vector<1x16xf32>
    %cst_14 = arith.constant dense<0xFF800000> : vector<1xf32>
    %45 = vector.multi_reduction <maximumf>, %44, %cst_14 [1] : vector<1x16xf32> to vector<1xf32>
    %46 = vector.shape_cast %45 : vector<1xf32> to vector<1x1xf32>
    %47 = vector.broadcast %46 : vector<1x1xf32> to vector<1x16xf32>
    %48 = arith.subf %44, %47 : vector<1x16xf32>
    %49 = math.exp %48 : vector<1x16xf32>
    %cst_15 = arith.constant dense<0.000000e+00> : vector<1xf32>
    %50 = vector.multi_reduction <add>, %49, %cst_15 [1] : vector<1x16xf32> to vector<1xf32>
    %51 = vector.shape_cast %50 : vector<1xf32> to vector<1x1xf32>
    %52 = tpu.reciprocal %51 {approx = true} : vector<1x1xf32> -> vector<1x1xf32>
    %53 = vector.broadcast %52 : vector<1x1xf32> to vector<1x16xf32>
    %54 = arith.mulf %49, %53 : vector<1x16xf32>
    %55 = vector.extract_strided_slice %19 {offsets = [0, 16], sizes = [8, 16], strides = [1, 1]} : vector<8x64xf32> to vector<8x16xf32>
    %56 = vector.broadcast %54 : vector<1x16xf32> to vector<8x16xf32>
    %57 = arith.mulf %55, %56 : vector<8x16xf32>
    %cst_16 = arith.constant dense<0.000000e+00> : vector<8xf32>
    %58 = vector.multi_reduction <add>, %57, %cst_16 [1] : vector<8x16xf32> to vector<8xf32>
    %59 = vector.shape_cast %58 : vector<8xf32> to vector<8x1xf32>
    %60 = vector.extract_strided_slice %20 {offsets = [0, 16], sizes = [8, 16], strides = [1, 1]} : vector<8x64xf32> to vector<8x16xf32>
    %cst_17 = arith.constant 0.000000e+00 : f32
    %61 = vector.broadcast %cst_17 : f32 to vector<8x16xf32>
    %62 = arith.maximumf %60, %61 : vector<8x16xf32>
    %63 = vector.broadcast %59 : vector<8x1xf32> to vector<8x16xf32>
    %64 = arith.mulf %62, %63 : vector<8x16xf32>
    %c0_18 = arith.constant 0 : index
    %c16 = arith.constant 16 : index
    %65 = vector.load %arg11[%c0_18, %c16] : memref<8x64xf32, #tpu.memory_space<vmem>>, vector<8x16xf32>
    tpu.vector_store %arg11[%c0_18, %c16], %64 {strides = array<i32>} : memref<8x64xf32, #tpu.memory_space<vmem>>, vector<8x16xf32>,
    %66 = vector.extract_strided_slice %21 {offsets = [0, 32], sizes = [1, 16], strides = [1, 1]} : vector<1x64xf32> to vector<1x16xf32>
    %cst_19 = arith.constant dense<0xFF800000> : vector<1xf32>
    %67 = vector.multi_reduction <maximumf>, %66, %cst_19 [1] : vector<1x16xf32> to vector<1xf32>
    %68 = vector.shape_cast %67 : vector<1xf32> to vector<1x1xf32>
    %69 = vector.broadcast %68 : vector<1x1xf32> to vector<1x16xf32>
    %70 = arith.subf %66, %69 : vector<1x16xf32>
    %71 = math.exp %70 : vector<1x16xf32>
    %cst_20 = arith.constant dense<0.000000e+00> : vector<1xf32>
    %72 = vector.multi_reduction <add>, %71, %cst_20 [1] : vector<1x16xf32> to vector<1xf32>
    %73 = vector.shape_cast %72 : vector<1xf32> to vector<1x1xf32>
    %74 = tpu.reciprocal %73 {approx = true} : vector<1x1xf32> -> vector<1x1xf32>
    %75 = vector.broadcast %74 : vector<1x1xf32> to vector<1x16xf32>
    %76 = arith.mulf %71, %75 : vector<1x16xf32>
    %77 = vector.extract_strided_slice %19 {offsets = [0, 32], sizes = [8, 16], strides = [1, 1]} : vector<8x64xf32> to vector<8x16xf32>
    %78 = vector.broadcast %76 : vector<1x16xf32> to vector<8x16xf32>
    %79 = arith.mulf %77, %78 : vector<8x16xf32>
    %cst_21 = arith.constant dense<0.000000e+00> : vector<8xf32>
    %80 = vector.multi_reduction <add>, %79, %cst_21 [1] : vector<8x16xf32> to vector<8xf32>
    %81 = vector.shape_cast %80 : vector<8xf32> to vector<8x1xf32>
    %82 = vector.extract_strided_slice %20 {offsets = [0, 32], sizes = [8, 16], strides = [1, 1]} : vector<8x64xf32> to vector<8x16xf32>
    %cst_22 = arith.constant 0.000000e+00 : f32
    %83 = vector.broadcast %cst_22 : f32 to vector<8x16xf32>
    %84 = arith.maximumf %82, %83 : vector<8x16xf32>
    %85 = vector.broadcast %81 : vector<8x1xf32> to vector<8x16xf32>
    %86 = arith.mulf %84, %85 : vector<8x16xf32>
    %c0_23 = arith.constant 0 : index
    %c32 = arith.constant 32 : index
    %87 = vector.load %arg11[%c0_23, %c32] : memref<8x64xf32, #tpu.memory_space<vmem>>, vector<8x16xf32>
    tpu.vector_store %arg11[%c0_23, %c32], %86 {strides = array<i32>} : memref<8x64xf32, #tpu.memory_space<vmem>>, vector<8x16xf32>,
    %88 = vector.extract_strided_slice %21 {offsets = [0, 48], sizes = [1, 16], strides = [1, 1]} : vector<1x64xf32> to vector<1x16xf32>
    %cst_24 = arith.constant dense<0xFF800000> : vector<1xf32>
    %89 = vector.multi_reduction <maximumf>, %88, %cst_24 [1] : vector<1x16xf32> to vector<1xf32>
    %90 = vector.shape_cast %89 : vector<1xf32> to vector<1x1xf32>
    %91 = vector.broadcast %90 : vector<1x1xf32> to vector<1x16xf32>
    %92 = arith.subf %88, %91 : vector<1x16xf32>
    %93 = math.exp %92 : vector<1x16xf32>
    %cst_25 = arith.constant dense<0.000000e+00> : vector<1xf32>
    %94 = vector.multi_reduction <add>, %93, %cst_25 [1] : vector<1x16xf32> to vector<1xf32>
    %95 = vector.shape_cast %94 : vector<1xf32> to vector<1x1xf32>
    %96 = tpu.reciprocal %95 {approx = true} : vector<1x1xf32> -> vector<1x1xf32>
    %97 = vector.broadcast %96 : vector<1x1xf32> to vector<1x16xf32>
    %98 = arith.mulf %93, %97 : vector<1x16xf32>
    %99 = vector.extract_strided_slice %19 {offsets = [0, 48], sizes = [8, 16], strides = [1, 1]} : vector<8x64xf32> to vector<8x16xf32>
    %100 = vector.broadcast %98 : vector<1x16xf32> to vector<8x16xf32>
    %101 = arith.mulf %99, %100 : vector<8x16xf32>
    %cst_26 = arith.constant dense<0.000000e+00> : vector<8xf32>
    %102 = vector.multi_reduction <add>, %101, %cst_26 [1] : vector<8x16xf32> to vector<8xf32>
    %103 = vector.shape_cast %102 : vector<8xf32> to vector<8x1xf32>
    %104 = vector.extract_strided_slice %20 {offsets = [0, 48], sizes = [8, 16], strides = [1, 1]} : vector<8x64xf32> to vector<8x16xf32>
    %cst_27 = arith.constant 0.000000e+00 : f32
    %105 = vector.broadcast %cst_27 : f32 to vector<8x16xf32>
    %106 = arith.maximumf %104, %105 : vector<8x16xf32>
    %107 = vector.broadcast %103 : vector<8x1xf32> to vector<8x16xf32>
    %108 = arith.mulf %106, %107 : vector<8x16xf32>
    %c0_28 = arith.constant 0 : index
    %c48 = arith.constant 48 : index
    %109 = vector.load %arg11[%c0_28, %c48] : memref<8x64xf32, #tpu.memory_space<vmem>>, vector<8x16xf32>
    tpu.vector_store %arg11[%c0_28, %c48], %108 {strides = array<i32>} : memref<8x64xf32, #tpu.memory_space<vmem>>, vector<8x16xf32>,
    %c0_29 = arith.constant 0 : index
    %c0_30 = arith.constant 0 : index
    %110 = vector.load %arg5[%c0_29, %c0_30] : memref<8x8xbf16, #tpu.memory_space<vmem>>, vector<8x8xbf16>
    %c0_31 = arith.constant 0 : index
    %c0_32 = arith.constant 0 : index
    %111 = vector.load %arg11[%c0_31, %c0_32] : memref<8x64xf32, #tpu.memory_space<vmem>>, vector<8x64xf32>
    %112 = arith.truncf %111 : vector<8x64xf32> to vector<8x64xbf16>
    %cst_33 = arith.constant dense<0.000000e+00> : vector<8x64xf32>
    %113 = tpu.matmul %110, %112, %cst_33 {dimension_numbers = #tpu.dot_dimension_numbers<[1], [0], [0], [1], [0, 0, 1, 1], [], []>} : vector<8x8xbf16>, vector<8x64xbf16>, vector<8x64xf32> -> vector<8x64xf32>
    %114 = vector.broadcast %7 : vector<8x1xf32> to vector<8x64xf32>
    %115 = arith.addf %113, %114 : vector<8x64xf32>
    %116 = arith.addf %1, %115 : vector<8x64xf32>
    %c0_34 = arith.constant 0 : index
    %c0_35 = arith.constant 0 : index
    %117 = vector.load %arg11[%c0_34, %c0_35] : memref<8x64xf32, #tpu.memory_space<vmem>>, vector<8x64xf32>
    tpu.vector_store %arg11[%c0_34, %c0_35], %116 {strides = array<i32>} : memref<8x64xf32, #tpu.memory_space<vmem>>, vector<8x64xf32>,
    %c0_36 = arith.constant 0 : index
    %c0_37 = arith.constant 0 : index
    %118 = vector.load %arg11[%c0_36, %c0_37] : memref<8x64xf32, #tpu.memory_space<vmem>>, vector<8x64xf32>
    %119 = vector.broadcast %5 : vector<8x1xf32> to vector<8x64xf32>
    %120 = arith.mulf %118, %119 : vector<8x64xf32>
    %121 = vector.broadcast %6 : vector<8x1xf32> to vector<8x64xf32>
    %122 = arith.addf %120, %121 : vector<8x64xf32>
    %c0_38 = arith.constant 0 : index
    %c0_39 = arith.constant 0 : index
    %123 = vector.load %arg6[%c0_38, %c0_39] : memref<16x8xbf16, #tpu.memory_space<vmem>>, vector<16x8xbf16>
    %124 = arith.truncf %122 : vector<8x64xf32> to vector<8x64xbf16>
    %cst_40 = arith.constant dense<0.000000e+00> : vector<16x64xf32>
    %125 = tpu.matmul %123, %124, %cst_40 {dimension_numbers = #tpu.dot_dimension_numbers<[1], [0], [0], [1], [0, 0, 1, 1], [], []>} : vector<16x8xbf16>, vector<8x64xbf16>, vector<16x64xf32> -> vector<16x64xf32>
    %c0_41 = arith.constant 0 : index
    %c0_42 = arith.constant 0 : index
    %126 = vector.load %arg7[%c0_41, %c0_42] : memref<16x1xf32, #tpu.memory_space<vmem>>, vector<16x1xf32>
    %127 = vector.broadcast %126 : vector<16x1xf32> to vector<16x64xf32>
    %128 = arith.addf %125, %127 : vector<16x64xf32>
    %129 = arith.negf %128 : vector<16x64xf32>
    %130 = math.exp %129 : vector<16x64xf32>
    %cst_43 = arith.constant 1.000000e+00 : f32
    %131 = vector.broadcast %cst_43 : f32 to vector<16x64xf32>
    %132 = arith.addf %131, %130 : vector<16x64xf32>
    %133 = arith.divf %131, %132 : vector<16x64xf32>
    %134 = arith.mulf %128, %133 : vector<16x64xf32>
    %c0_44 = arith.constant 0 : index
    %c0_45 = arith.constant 0 : index
    %135 = vector.load %arg8[%c0_44, %c0_45] : memref<8x16xbf16, #tpu.memory_space<vmem>>, vector<8x16xbf16>
    %136 = arith.truncf %134 : vector<16x64xf32> to vector<16x64xbf16>
    %cst_46 = arith.constant dense<0.000000e+00> : vector<8x64xf32>
    %137 = tpu.matmul %135, %136, %cst_46 {dimension_numbers = #tpu.dot_dimension_numbers<[1], [0], [0], [1], [0, 0, 1, 1], [], []>} : vector<8x16xbf16>, vector<16x64xbf16>, vector<8x64xf32> -> vector<8x64xf32>
    %138 = vector.broadcast %8 : vector<8x1xf32> to vector<8x64xf32>
    %139 = arith.addf %137, %138 : vector<8x64xf32>
    %140 = arith.addf %118, %139 : vector<8x64xf32>
    %c0_47 = arith.constant 0 : index
    %c0_48 = arith.constant 0 : index
    %c0_49 = arith.constant 0 : index
    %141 = vector.load %arg10[%c0_47, %c0_48, %c0_49] : memref<1x8x64xf32, #tpu.memory_space<vmem>>, vector<1x8x64xf32>
    %142 = vector.shape_cast %141 : vector<1x8x64xf32> to vector<8x64xf32>
    %143 = vector.shape_cast %140 : vector<8x64xf32> to vector<1x8x64xf32>
    tpu.vector_store %arg10[%c0_47, %c0_48, %c0_49], %143 {strides = array<i32>} : memref<1x8x64xf32, #tpu.memory_space<vmem>>, vector<1x8x64xf32>,
    return
  }
  func.func @transform_0(%arg0: i32, %arg1: i32) -> (i32, i32, i32) {
    %c0_i32 = arith.constant 0 : i32
    %c0_i32_0 = arith.constant 0 : i32
    return %arg0, %c0_i32, %arg1 : i32, i32, i32
  }
  func.func @transform_1(%arg0: i32, %arg1: i32) -> (i32, i32) {
    %c0_i32 = arith.constant 0 : i32
    %c0_i32_0 = arith.constant 0 : i32
    %c0_i32_1 = arith.constant 0 : i32
    return %c0_i32, %c0_i32_0 : i32, i32
  }
  func.func @transform_2(%arg0: i32, %arg1: i32) -> (i32, i32) {
    %c0_i32 = arith.constant 0 : i32
    %c0_i32_0 = arith.constant 0 : i32
    %c0_i32_1 = arith.constant 0 : i32
    return %c0_i32, %c0_i32_0 : i32, i32
  }
  func.func @transform_3(%arg0: i32, %arg1: i32) -> (i32, i32) {
    %c0_i32 = arith.constant 0 : i32
    %c0_i32_0 = arith.constant 0 : i32
    %c0_i32_1 = arith.constant 0 : i32
    return %c0_i32, %c0_i32_0 : i32, i32
  }
  func.func @transform_4(%arg0: i32, %arg1: i32) -> (i32, i32) {
    %c0_i32 = arith.constant 0 : i32
    %c0_i32_0 = arith.constant 0 : i32
    %c0_i32_1 = arith.constant 0 : i32
    return %c0_i32, %c0_i32_0 : i32, i32
  }
  func.func @transform_5(%arg0: i32, %arg1: i32) -> (i32, i32) {
    %c0_i32 = arith.constant 0 : i32
    %c0_i32_0 = arith.constant 0 : i32
    %c0_i32_1 = arith.constant 0 : i32
    return %c0_i32, %c0_i32_0 : i32, i32
  }
  func.func @transform_6(%arg0: i32, %arg1: i32) -> (i32, i32) {
    %c0_i32 = arith.constant 0 : i32
    %c0_i32_0 = arith.constant 0 : i32
    %c0_i32_1 = arith.constant 0 : i32
    return %c0_i32, %c0_i32_0 : i32, i32
  }
  func.func @transform_7(%arg0: i32, %arg1: i32) -> (i32, i32) {
    %c0_i32 = arith.constant 0 : i32
    %c0_i32_0 = arith.constant 0 : i32
    %c0_i32_1 = arith.constant 0 : i32
    return %c0_i32, %c0_i32_0 : i32, i32
  }
  func.func @transform_8(%arg0: i32, %arg1: i32) -> (i32, i32, i32) {
    %c0_i32 = arith.constant 0 : i32
    %c0_i32_0 = arith.constant 0 : i32
    return %arg0, %c0_i32, %arg1 : i32, i32, i32
  }
}

</mosaic_0001>

<bundles_post_ra>
// kernel: tpu_custom_call.1
= control target key start
LH: loop header
LB: loop body
LE: loop exit
PB: predicated region body
PF: predicated region fallthrough
CT: control target
= control target key end

     0   :  { %13 = vsyncpa [#allocation4], 0  ;;  %s1315_s0 = inlined_call_operand.vmem [shape: f32[2,8,64], index: 0, kind: input, shape index: {}]   ;;  %s1316_s1 = inlined_call_operand.vmem [shape: bf16[24,8], index: 1, kind: input, shape index: {}]   ;;  %s1317_s2 = inlined_call_operand.vmem [shape: f32[24,1], index: 2, kind: input, shape index: {}]   ;;  %s1318_s3 = inlined_call_operand.vmem [shape: bf16[8,8], index: 3, kind: input, shape index: {}]   ;;  %s1319_s4 = inlined_call_operand.vmem [shape: bf16[16,8], index: 4, kind: input, shape index: {}]   ;;  %s1320_s5 = inlined_call_operand.vmem [shape: f32[16,1], index: 5, kind: input, shape index: {}]   ;;  %s1321_s6 = inlined_call_operand.vmem [shape: bf16[8,16], index: 6, kind: input, shape index: {}]   ;;  %s1322_s7 = inlined_call_operand.vmem [shape: f32[8,6], index: 7, kind: input, shape index: {}]   ;;  %s1323_s8 = inlined_call_operand.hbm [shape: f32[2,8,64], index: 8, kind: output, shape index: {}]  }
   0x1   :  { %15 = vsyncpa [#allocation4 + $0x1], 0  ;;  %s1123_s27 = smov 0   ;;  %s1125_s28 = smov 0  }
   0x2   :  { %s1127_s29 = smov 0   ;;  %s1129_s30 = smov 0  }
   0x3   :  { %s1131_s9 = smov 0   ;;  %s1133_s10 = smov 0  }
   0x4 LB: > { %s831_s11 = sadd.s32 4294967295, %s1064_s10   ;;  %s832_s12 = sadd.s32 4294967294, %s1064_s10   ;;  %s1064_s10 = sphi %s1133_s10, %s21_s10   ;;  %s1060_s9 = sphi %s1131_s9, %s1330_s9   ;;  %s1056_s30 = sphi %s1129_s30, %s1329_s30   ;;  %s1052_s29 = sphi %s1127_s29, %s1328_s29   ;;  %s1048_s28 = sphi %s1125_s28, %s1327_s28   ;;  %s1044_s27 = sphi %s1123_s27, %s1326_s27  }
   0x5   : > { %s33_s13 = sadd.s32 1, %s1060_s9  ;;  %s217_s14 = sadd.s32 1, %s1052_s29 }
   0x6   : > { %p35_p0 = scmp.ge.s32.totalorder %s33_s13, 2  ;;  %p227_p1 = scmp.ne.s32.totalorder %s1052_s29, %s1048_s28 }
   0x7   : > { %p228_p2 = scmp.eq.s32.totalorder %s831_s11, 1  ;;  %p233_p3 = scmp.ne.s32.totalorder %s1048_s28, %s1044_s27 }
   0x8   : > { %s1332_s13 = smov (%p35_p0, %s33_s13), 0  ;;  %p234_p5 = scmp.eq.s32.totalorder %s832_s12, 1 }
   0x9   : > { %p1163_p4 = por %p228_p2, %p227_p1  ;;  %s212_s16 = ssub.s32 %s1060_s9, %s1332_s13 }
   0xa   : > { %p835_p6 = scmp.ge.s32.totalorder %s1064_s10, 1  ;;  %p215_p7 = scmp.eq.s32.totalorder %s212_s16, 0 }
   0xb   : > { %p1170_p8 = por %p234_p5, %p233_p3  ;;  %p283_p9 = scmp.lt.s32.totalorder %s1064_s10, 3 }
   0xc   : > { %s1176_s18 = scalar_select %p215_p7, %s1052_s29, %s217_s14  }
   0xd   : > { %p284_p10 = pnand %p835_p6, %p283_p9 }
   0xe   : > { %p319_p11 = scmp.lt.s32.totalorder (!%p284_p10), %s1056_s30, 1  ;;  %s1068_s20 = smov (!%p284_p10), 96  }
   0xf   : > { %287 = sbr.rel (%p284_p10) target bundleno = 1728 (0x6c0), region = 52  ;;  %s1069_s21 = smov (!%p284_p10), 112  }
  0x10   : > { %s1070_s22 = smov (!%p284_p10), 80   ;;  %s849_s11 = sshll.u32 (!%p284_p10), %s1056_s30, 7 }
  0x14   : > { %v1181_v0 = vld [vmem:[%s1322_s7] sm:$0xff]  ;;  %v1066_v1 = vmov 0   ;;  %v1067_v2 = vmov 1   ;;  %vm370_vm0 = vcmask 64512   ;;  %v346_v4 = vld [vmem:[%s1317_s2 + $0x10] sm:$0xff]  ;;  %s320_s25 = scalar_select %p319_p11, %s1056_s30, 1  ;;  %v441_v49 = vlaneseq }
  0x15   : > { %952 = vset.pattern.permute.xlu0 %v1066_v1  ;;  %954 = vset.pattern.permute.xlu1 %v1066_v1  ;;  %v961_v3 = vld [vmem:[%s1316_s1] sm:$0xff]   ;;  %vm377_vm1 = vcmask 1043456   ;;  %v962_v12 = vld [vmem:[%s1316_s1 + $0x8] ss:$0 sps:$4 sm:$0xff]   ;;  %vm484_vm2 = vcmask 385280   ;;  %vm453_vm3 = vcmask 254080  }
  0x16   : > { %331 = vperm.xlu0 %952, %v1181_v0   ;;  %863 = vmatprep.mubr.msk.bf16.mxu0 %vm370_vm0, %v961_v3  ;;  %s837_s26 = sshll.u32 %s320_s25, 3  ;;  %vm515_vm4 = vcmask 516480   ;;  %vm429_vm5 = vcmask 122880   ;;  %v344_v40 = vld [vmem:[%s1317_s2] sm:$0xff]  ;;  %v442_v50 = vshrl.u32 %v441_v49, 7  ;;  %vm446_vm6 = vcmask 130048  }
  0x17   : > { %359 = vperm.xlu1 %954, %v346_v4   ;;  %s325_s14 = scalar_lea.vmem %s1315_s0, %s837_s26  ;;  %vm1072_vm7 = vmmov 0   ;;  %vm482_vm8 = vcmask 261248   ;;  %vm513_vm9 = vcmask 392448   ;;  %vm544_vm10 = vcmask 523648   ;;  %s316_s25 = sand.u32 1, %s1048_s28  }
  0x18   : > { %v1199_v6 = vld [vmem:[%s325_s14] sm:$0xff]  ;;  %v443_v51 = vsub.s32 0, %v442_v50  ;;  %vm600_vm11 = vcmask 523264   ;;  %s836_s26 = sshll.u32 %s316_s25, 3  ;;  %s746_s30 = scalar_lea.sflag [#allocation4], %s316_s25 }
  0x19   : > { %s318_s12 = scalar_lea.vmem [#allocation3], %s836_s26 }
  0x1a   : > { %953 = vset.pattern.permute.xlu0 %v1067_v2  ;;  %s760_s14 = sshll.u32 %s318_s12, 4  ;;  %s1270_s14 = int_to_ptr.vmem [resolvable:$true] %s760_s14 }
  0x1b   : > { %336 = vperm.xlu0 %953, %v1181_v0  }
  0x91   : > { %v332_v5 = vpop.permute.xlu0 %331 }
  0x92   : > { %v334_v7 = vmul.f32 %v332_v5, %v1199_v6  ;;  %v360_v13 = vpop.permute.xlu1 %359 }
  0x96   : > { %v337_v8 = vpop.permute.xlu0 %336 }
  0x97   : > { %v339_v9 = vadd.f32 %v337_v8, %v334_v7 }
  0x99   : > { %v343_v10 = vpack.c.bf16 %v339_v9, %v339_v9 }
  0x9b   : > { %885 = vmatprep.subr.msk.bf16.mxu0 %vm377_vm1, %v343_v10  ;;  %v379_v11 = vsel %vm377_vm1, %v343_v10, 0 }
  0x9c   : > { %862 = vmatpush3.bf16.msra.mxu0 %v379_v11  ;;  %v345_v11 = vld [vmem:[%s1317_s2 + $0x8] sm:$0xff] }
  0x9f   : > { %864 = vmatmul.mubr.msk.bf16.vlgmr.msra.gmra.mxu0 %vm370_vm0, %v962_v12 }
 0x15f   : > { %v865_v14 = vpop.f32.mrf.mxu0 }
 0x160   : > { %v424_v15 = vadd.f32 %v865_v14, %v360_v13 }
 0x161   : > { %v1208_v16 = vpop.f32.mrf.mxu0 }
 0x162   : > { %v485_v17 = vsel %vm484_vm2, %v424_v15, -inf  ;;  %v454_v18 = vsel %vm453_vm3, %v424_v15, -inf  ;;  %v516_v20 = vsel %vm515_vm4, %v424_v15, -inf  ;;  %v430_v33 = vsel %vm429_vm5, %v424_v15, -inf }
 0x163   : > { %486 = vmax.xlane.f32.xlu0 %v485_v17  ;;  %455 = vmax.xlane.f32.xlu1 %v454_v18  ;;  %v866_v19 = vpop.f32.mrf.mxu0  ;;  %v1071_v18 = vmov 0.0  }
 0x164   : > { %867 = vmatprep.subr.bf16.mxu1 %v1071_v18  ;;  %873 = vmatprep.subr.bf16.mxu0 %v1071_v18  ;;  %v1073_v19 = vmov 4  }
 0x165   : > { %869 = vmatprep.mubr.msk.bf16.mxu1 %vm1072_vm7, %v1071_v18  ;;  %875 = vmatprep.mubr.msk.bf16.mxu0 %vm1072_vm7, %v1071_v18 }
 0x166   : > { %955 = vset.pattern.permute.xlu0 %v1073_v19 }
 0x167   : > { %517 = vmax.xlane.f32.xlu1 %v516_v20  ;;  %v1074_v20 = vmov 2  }
 0x1ec   : > { %v487_v21 = vpop.xlane.xlu0 %486  ;;  %v456_v22 = vpop.xlane.xlu1 %455 }
 0x1ed   : > { %v488_v23 = vsub.f32 %v424_v15, %v487_v21  ;;  %v457_v24 = vsub.f32 %v424_v15, %v456_v22  ;;  %v1075_v21 = vmov 3  }
 0x1ef   : > { %v489_v25 = vmul.f32 1.442695, %v488_v23  ;;  %v458_v26 = vmul.f32 1.442695, %v457_v24  ;;  %v418_v23 = vpop.f32.mrf.mxu0 }
 0x1f0   : > { %v518_v27 = vpop.xlane.xlu1 %517 }
 0x1f1   : > { %964 = vpow2.f32 %v489_v25  ;;  %v519_v28 = vsub.f32 %v424_v15, %v518_v27 }
 0x1f2   : > { %966 = vpow2.f32 %v458_v26 }
 0x1f3   : > { %v520_v29 = vmul.f32 1.442695, %v519_v28 }
 0x1f5   : > { %968 = vpow2.f32 %v520_v29 }
 0x1fe   : > { %v965_v30 = vpop.eup %964 }
 0x1ff   : > { %v967_v31 = vpop.eup %966  ;;  %492 = vrot.lane.b32.xlu1 %v965_v30, %s1068_s20 }
 0x200   : > { %461 = vrot.lane.b32.xlu0 %v967_v31, %s1069_s21 }
 0x202   : > { %v969_v32 = vpop.eup %968 }
 0x203   : > { %523 = vrot.lane.b32.xlu1 %v969_v32, %s1070_s22 }
 0x21f   : > { %431 = vmax.xlane.f32.xlu0 %v430_v33 }
 0x271   : > { %v493_v34 = vpop.permute.xlu1 %492 }
 0x272   : > { %v462_v35 = vpop.permute.xlu0 %461  ;;  %v495_v36 = vsel %vm429_vm5, %v493_v34, 0.0 }
 0x273   : > { %v464_v37 = vsel %vm429_vm5, %v462_v35, 0.0  ;;  %496 = vadd.xlane.f32.xlu0 %v495_v36  ;;  %v546_v36 = vld [vmem:[%s1318_s3] sm:$0xf] }
 0x274   : > { %465 = vadd.xlane.f32.xlu1 %v464_v37  ;;  %v616_v37 = vld [vmem:[%s1320_s5] sm:$0xff] }
 0x275   : > { %v524_v38 = vpop.permute.xlu1 %523 }
 0x276   : > { %v526_v39 = vsel %vm429_vm5, %v524_v38, 0.0  ;;  %v617_v38 = vld [vmem:[%s1320_s5 + $0x8] sm:$0xff] }
 0x277   : > { %527 = vadd.xlane.f32.xlu0 %v526_v39 }
 0x285   : > { %349 = vperm.xlu1 %954, %v344_v40  }
 0x2a8   : > { %v432_v41 = vpop.xlane.xlu0 %431 }
 0x2a9   : > { %v433_v42 = vsub.f32 %v424_v15, %v432_v41 }
 0x2ab   : > { %v434_v43 = vmul.f32 1.442695, %v433_v42 }
 0x2ad   : > { %970 = vpow2.f32 %v434_v43 }
 0x2ba   : > { %v971_v44 = vpop.eup %970 }
 0x2bb   : > { %v436_v45 = vsel %vm429_vm5, %v971_v44, 0.0 }
 0x2bc   : > { %437 = vadd.xlane.f32.xlu0 %v436_v45 }
 0x2fc   : > { %v497_v46 = vpop.xlane.xlu0 %496 }
 0x2fd   : > { %v466_v47 = vpop.xlane.xlu1 %465  ;;  %972 = vrcp.f32 %v497_v46 }
 0x2fe   : > { %974 = vrcp.f32 %v466_v47 }
 0x300   : > { %v528_v48 = vpop.xlane.xlu0 %527 }
 0x301   : > { %976 = vrcp.f32 %v528_v48  ;;  %v350_v53 = vpop.permute.xlu1 %349 }
 0x302   : > { %v416_v57 = vadd.f32 %v1208_v16, %v350_v53  ;;  %v963_v53 = vld [vmem:[%s1319_s4] sm:$0xff]  }
 0x30a   : > { %v973_v52 = vpop.eup %972 }
 0x30b   : > { %v975_v54 = vpop.eup %974  ;;  %v499_v55 = vmul.f32 %v973_v52, %v965_v30 }
 0x30c   : > { %v468_v56 = vmul.f32 %v975_v54, %v967_v31 }
 0x30d   : > { %v503_v58 = vrot.slane %v499_v55, %v443_v51 }
 0x30e   : > { %v977_v59 = vpop.eup %976  ;;  %v472_v60 = vrot.slane %v468_v56, %v443_v51 }
 0x30f   : > { %v504_v61 = vmul.f32 %v503_v58, %v416_v57  ;;  %v530_v62 = vmul.f32 %v977_v59, %v969_v32 }
 0x310   : > { %v473_v63 = vmul.f32 %v472_v60, %v416_v57 }
 0x311   : > { %506 = vrot.lane.b32.xlu1 %v504_v61, %s1068_s20  ;;  %v534_v2 = vrot.slane %v530_v62, %v443_v51  ;;  %s1268_s20 = scalar_lea.hbm %s1323_s8, %s849_s11 }
 0x312   : > { %475 = vrot.lane.b32.xlu0 %v473_v63, %s1069_s21  ;;  %s988_s21 = scalar_lea.vmem %s1270_s14, 128 }
 0x313   : > { %v535_v3 = vmul.f32 %v534_v2, %v416_v57  ;;  %p989_p12 = scmp.ne.s32.totalorder %s1270_s14, %s988_s21 }
 0x315   : > { %537 = vrot.lane.b32.xlu1 %v535_v3, %s1070_s22  ;;  %p990_p13 = pnand %p989_p12, %p1163_p4  ;;  %s1077_s22 = smov [#allocation3]  }
 0x316   : > { %s992_s23 = sshll.u32 %s1077_s22, 4  ;;  %s993_s23 = int_to_ptr.vmem [resolvable:$false] %s992_s23 }
 0x317   : > { %p991_p0 = pneg %p990_p13  ;;  %s994_s24 = scalar_lea.vmem %s993_s23, 256 }
 0x318   : > { %p995_p1 = scmp.lt.s32.totalorder %s1270_s14, %s993_s23  ;;  %p996_p2 = scmp.lt.s32.totalorder %s994_s24, %s988_s21 }
 0x31a   : > { %p997_p3 = por %p996_p2, %p995_p1 }
 0x31c   : > { %p998_p5 = pnand %p997_p3, %p991_p0 }
 0x345   : > { %v438_v4 = vpop.xlane.xlu0 %437 }
 0x346   : > { %978 = vrcp.f32 %v438_v4 }
 0x353   : > { %v979_v5 = vpop.eup %978 }
 0x354   : > { %v440_v7 = vmul.f32 %v979_v5, %v971_v44 }
 0x356   : > { %v444_v8 = vrot.slane %v440_v7, %v443_v51 }
 0x358   : > { %v445_v9 = vmul.f32 %v444_v8, %v416_v57 }
 0x35a   : > { %v447_v10 = vsel %vm446_vm6, %v445_v9, 0.0 }
 0x35b   : > { %448 = vadd.xlane.f32.xlu1 %v447_v10 }
 0x36c   : > { %354 = vperm.xlu1 %954, %v345_v11   ;;  %v694_v11 = vld [vmem:[%s1321_s6] sm:$0xf] }
 0x370   : > { %956 = vset.pattern.permute.xlu1 %v1074_v20 }
 0x371   : > { %604 = vperm.xlu1 %956, %v1181_v0  }
 0x375   : > { %957 = vset.pattern.permute.xlu1 %v1075_v21 }
 0x376   : > { %609 = vperm.xlu1 %957, %v1181_v0  }
 0x37a   : > { %958 = vset.pattern.permute.xlu1 %v1066_v1 }
 0x37b   : > { %620 = vperm.xlu1 %958, %v616_v37  }
 0x37f   : > { %625 = vperm.xlu1 %958, %v617_v38  }
 0x383   : > { %v507_v12 = vpop.permute.xlu1 %506 }
 0x384   : > { %v476_v13 = vpop.permute.xlu0 %475  ;;  %v509_v15 = vsel %vm446_vm6, %v507_v12, 0.0 }
 0x385   : > { %v478_v14 = vsel %vm446_vm6, %v476_v13, 0.0 }
 0x386   : > { %479 = vadd.xlane.f32.xlu0 %v478_v14 }
 0x387   : > { %v538_v16 = vpop.permute.xlu1 %537 }
 0x388   : > { %v540_v17 = vsel %vm446_vm6, %v538_v16, 0.0 }
 0x38a   : > { %510 = vadd.xlane.f32.xlu0 %v509_v15 }
 0x38e   : > { %541 = vadd.xlane.f32.xlu0 %v540_v17 }
 0x3a4   : > { %550 = vperm.xlu0 %955, %v1181_v0  }
 0x3e4   : > { %v449_v22 = vpop.xlane.xlu1 %448 }
 0x3e8   : > { %v355_v24 = vpop.permute.xlu1 %354 }
 0x3e9   : > { %v419_v25 = vadd.f32 %v418_v23, %v355_v24 }
 0x3eb   : > { %v450_v26 = vmax.f32 %v419_v25, 0.0 }
 0x3ec   : > { %v605_v46 = vpop.permute.xlu1 %604 }
 0x3ed   : > { %v451_v27 = vmul.f32 %v450_v26, %v449_v22 }
 0x3ef   : > { %452 = vst.msk [vmem:[#allocation2] sm:$0xff] %vm446_vm6, %v451_v27 }
 0x3f1   : > { %v610_v48 = vpop.permute.xlu1 %609 }
 0x3f6   : > { %v621_v54 = vpop.permute.xlu1 %620 }
 0x3fa   : > { %v626_v59 = vpop.permute.xlu1 %625 }
 0x40f   : > { %v480_v28 = vpop.xlane.xlu0 %479 }
 0x410   : > { %v481_v29 = vmul.f32 %v480_v28, %v450_v26 }
 0x412   : > { %483 = vst.msk [vmem:[#allocation2] sm:$0xff] %vm482_vm8, %v481_v29 }
 0x413   : > { %v511_v30 = vpop.xlane.xlu0 %510 }
 0x414   : > { %v512_v31 = vmul.f32 %v511_v30, %v450_v26 }
 0x416   : > { %514 = vst.msk [vmem:[#allocation2] sm:$0xff] %vm513_vm9, %v512_v31 }
 0x417   : > { %v542_v32 = vpop.xlane.xlu0 %541 }
 0x418   : > { %v543_v33 = vmul.f32 %v542_v32, %v450_v26 }
 0x41a   : > { %545 = vst.msk [vmem:[#allocation2] sm:$0xff] %vm544_vm10, %v543_v33 }
 0x41f   : > { %v551_v39 = vpop.permute.xlu0 %550 }
 0x421   : > { %v547_v1 = vld [vmem:[#allocation2] sm:$0xff] }
 0x422   : > { %v548_v34 = vpack.c.bf16 %v547_v1, %v547_v1 }
 0x424   : > { %v557_v35 = vsel %vm377_vm1, %v548_v34, 0 }
 0x425   : > { %868 = vmatpush3.bf16.msra.mxu1 %v557_v35 }
 0x426   : > { %879 = vmatprep.subr.bf16.mxu1 %v1071_v18 }
 0x428   : > { %870 = vmatmul.mubr.msk.bf16.vlgmr.msra.gmra.mxu1 %vm370_vm0, %v546_v36 }
 0x429   : > { %881 = vmatprep.mubr.msk.bf16.mxu1 %vm1072_vm7, %v1071_v18 }
 0x4e8   : > { %v593_v40 = vpop.f32.mrf.mxu1 }
 0x4e9   : > { %v594_v41 = vadd.f32 %v593_v40, %v551_v39 }
 0x4ea   : > { %v871_v42 = vpop.f32.mrf.mxu1 }
 0x4eb   : > { %v599_v43 = vadd.f32 %v594_v41, %v1199_v6  ;;  %v1076_v6 = vmov 5  }
 0x4ec   : > { %v596_v44 = vpop.f32.mrf.mxu1  ;;  %959 = vset.pattern.permute.xlu1 %v1076_v6  ;;  %960 = vset.pattern.permute.xlu0 %v1076_v6 }
 0x4ed   : > { %601 = vst.msk [vmem:[#allocation2] sm:$0xff] %vm600_vm11, %v599_v43  ;;  %697 = vperm.xlu1 %959, %v1181_v0  }
 0x4ee   : > { %v872_v45 = vpop.f32.mrf.mxu1 }
 0x4f4   : > { %v602_v47 = vld [vmem:[#allocation2] sm:$0xff] }
 0x4f5   : > { %v607_v49 = vmul.f32 %v605_v46, %v602_v47 }
 0x4f7   : > { %v612_v50 = vadd.f32 %v610_v48, %v607_v49 }
 0x4f9   : > { %v615_v51 = vpack.c.bf16 %v612_v50, %v612_v50 }
 0x4fb   : > { %v637_v52 = vsel %vm377_vm1, %v615_v51, 0 }
 0x4fc   : > { %874 = vmatpush3.bf16.msra.mxu0 %v637_v52 }
 0x4ff   : > { %876 = vmatmul.mubr.msk.bf16.vlgmr.msra.gmra.mxu0 %vm370_vm0, %v963_v53 }
 0x568   : > { %v698_v12 = vpop.permute.xlu1 %697 }
 0x5bf   : > { %v673_v55 = vpop.f32.mrf.mxu0 }
 0x5c0   : > { %v674_v56 = vadd.f32 %v673_v55, %v621_v54 }
 0x5c1   : > { %v877_v57 = vpop.f32.mrf.mxu0 }
 0x5c2   : > { %v845_v58 = vmul.f32 -1.442695, %v674_v56 }
 0x5c3   : > { %v676_v60 = vpop.f32.mrf.mxu0 }
 0x5c4   : > { %980 = vpow2.f32 %v845_v58  ;;  %v677_v61 = vadd.f32 %v676_v60, %v626_v59 }
 0x5c5   : > { %v878_v62 = vpop.f32.mrf.mxu0 }
 0x5c6   : > { %v846_v63 = vmul.f32 -1.442695, %v677_v61 }
 0x5c8   : > { %982 = vpow2.f32 %v846_v63 }
 0x5d1   : > { %v981_v2 = vpop.eup %980 }
 0x5d2   : > { %v686_v3 = vadd.f32 1.0, %v981_v2 }
 0x5d4   : > { %984 = vrcp.f32 %v686_v3 }
 0x5d5   : > { %v983_v4 = vpop.eup %982 }
 0x5d6   : > { %v687_v5 = vadd.f32 1.0, %v983_v4 }
 0x5d8   : > { %986 = vrcp.f32 %v687_v5 }
 0x5e1   : > { %v985_v0 = vpop.eup %984 }
 0x5e2   : > { %v692_v8 = vmul.f32 %v985_v0, %v674_v56 }
 0x5e5   : > { %v987_v7 = vpop.eup %986 }
 0x5e6   : > { %v693_v9 = vmul.f32 %v987_v7, %v677_v61 }
 0x5e8   : > { %v695_v10 = vpack.c.bf16 %v693_v9, %v692_v8 }
 0x5ea   : > { %880 = vmatpush3.bf16.msra.mxu1 %v695_v10 }
 0x5ed   : > { %882 = vmatmul.mubr.msk.bf16.vlgmr.msra.gmra.mxu1 %vm446_vm6, %v694_v11 }
 0x6ad   : > { %v737_v13 = vpop.f32.mrf.mxu1 }
 0x6ae   : > { %v738_v14 = vadd.f32 %v737_v13, %v698_v12 }
 0x6af   : > { %v883_v15 = vpop.f32.mrf.mxu1 }
 0x6b0   : > { %v743_v16 = vadd.f32 %v738_v14, %v602_v47 }
 0x6b1   : > { %v740_v17 = vpop.f32.mrf.mxu1 }
 0x6b2   : > { %744 = vst.msk [vmem:[%s318_s12] sm:$0xff] %vm600_vm11, %v743_v16 }
 0x6b3   : > { %v884_v18 = vpop.f32.mrf.mxu1 }
 0x6b4   : > { %1001 = shalt.err (!%p998_p5)
}
 0x6b5   : > { %s1002_s26 = scalar_lea.hbm %s1268_s20, 128  ;;  %s1006_s12 = scalar_lea.hbm %s1323_s8, 256 }
 0x6b6   : > { %p1003_p6 = scmp.ne.s32.totalorder %s1268_s20, %s1002_s26  ;;  %p1007_p10 = scmp.lt.s32.totalorder %s1268_s20, %s1323_s8 }
 0x6b7   : > { %p1008_p11 = scmp.lt.s32.totalorder %s1006_s12, %s1002_s26 }
 0x6b8   : > { %p1004_p7 = pnand %p1003_p6, %p1163_p4 }
 0x6b9   : > { %p1009_p12 = por %p1008_p11, %p1007_p10 }
 0x6ba   : > { %p1005_p9 = pneg %p1004_p7 }
 0x6bc   : > { %p1010_p13 = pnand %p1009_p12, %p1005_p9 }
 0x6be   : > { %1013 = shalt.err (!%p1010_p13)
}
 0x6bf   : > { %886 = dma.vmem_to_hbm [thread:$0]  (%p1163_p4), %s1270_s14, 128, %s1268_s20, %s746_s30  }
 0x6c0 PF: > { %p892_p0 = scmp.ge.s32.totalorder %s1064_s10, 2  ;;  %s772_s21 = sand.u32 1, %s1044_s27  }
 0x6c1   : > { %s773_s22 = scalar_lea.sflag [#allocation4], %s772_s21 }
 0x6c2   : > { %p889_p1 = pnand %p892_p0, %p1170_p8 }
 0x6c4   : > { %p890_p2 = pneg %p889_p1 }
 0x6c6   : > { %1039 = dma.done.wait (%p890_p2), %s773_s22, 128  }
 0x6c7   : > { %1041 = vsyncadd (%p890_p2), %s773_s22, 4294967168  ;;  %s21_s10 = sadd.s32 1, %s1064_s10   ;;  %s1326_s27 = smov %s1048_s28 }
 0x6c8   : > { %p18_p3 = scmp.ge.s32.totalorder %s21_s10, 4   ;;  %s1327_s28 = smov %s1052_s29 }
 0x6c9   : > { %s1328_s29 = smov %s1176_s18  ;;  %s1329_s30 = smov %s1060_s9 }
 0x6ca   : > { %s1330_s9 = smov %s1332_s13  ;;  %20 = sbr.rel (!%p18_p3) target bundleno = 4 (0x4), region = 87 }
 0x6cf   :  { %778 = vsyncpa [#allocation4], 1 }
 0x6d0   :  { %780 = vsyncpa [#allocation4 + $0x1], 1 }

// kernel: tpu_custom_call.1
= control target key start
LH: loop header
LB: loop body
LE: loop exit
PB: predicated region body
PF: predicated region fallthrough
CT: control target
= control target key end

     0   :  { %13 = vsyncpa [#allocation4], 0  ;;  %s1315_s0 = inlined_call_operand.vmem [shape: f32[2,8,64], index: 0, kind: input, shape index: {}]   ;;  %s1316_s1 = inlined_call_operand.vmem [shape: bf16[24,8], index: 1, kind: input, shape index: {}]   ;;  %s1317_s2 = inlined_call_operand.vmem [shape: f32[24,1], index: 2, kind: input, shape index: {}]   ;;  %s1318_s3 = inlined_call_operand.vmem [shape: bf16[8,8], index: 3, kind: input, shape index: {}]   ;;  %s1319_s4 = inlined_call_operand.vmem [shape: bf16[16,8], index: 4, kind: input, shape index: {}]   ;;  %s1320_s5 = inlined_call_operand.vmem [shape: f32[16,1], index: 5, kind: input, shape index: {}]   ;;  %s1321_s6 = inlined_call_operand.vmem [shape: bf16[8,16], index: 6, kind: input, shape index: {}]   ;;  %s1322_s7 = inlined_call_operand.vmem [shape: f32[8,6], index: 7, kind: input, shape index: {}]   ;;  %s1323_s8 = inlined_call_operand.hbm [shape: f32[2,8,64], index: 8, kind: output, shape index: {}]  }
   0x1   :  { %15 = vsyncpa [#allocation4 + $0x1], 0  ;;  %s1123_s27 = smov 0   ;;  %s1125_s28 = smov 0  }
   0x2   :  { %s1127_s29 = smov 0   ;;  %s1129_s30 = smov 0  }
   0x3   :  { %s1131_s9 = smov 0   ;;  %s1133_s10 = smov 0  }
   0x4 LB: > { %s831_s11 = sadd.s32 4294967295, %s1064_s10   ;;  %s832_s12 = sadd.s32 4294967294, %s1064_s10   ;;  %s1064_s10 = sphi %s1133_s10, %s21_s10   ;;  %s1060_s9 = sphi %s1131_s9, %s1330_s9   ;;  %s1056_s30 = sphi %s1129_s30, %s1329_s30   ;;  %s1052_s29 = sphi %s1127_s29, %s1328_s29   ;;  %s1048_s28 = sphi %s1125_s28, %s1327_s28   ;;  %s1044_s27 = sphi %s1123_s27, %s1326_s27  }
   0x5   : > { %s33_s13 = sadd.s32 1, %s1060_s9  ;;  %s217_s14 = sadd.s32 1, %s1052_s29 }
   0x6   : > { %p35_p0 = scmp.ge.s32.totalorder %s33_s13, 2  ;;  %p227_p1 = scmp.ne.s32.totalorder %s1052_s29, %s1048_s28 }
   0x7   : > { %p228_p2 = scmp.eq.s32.totalorder %s831_s11, 1  ;;  %p233_p3 = scmp.ne.s32.totalorder %s1048_s28, %s1044_s27 }
   0x8   : > { %s1332_s13 = smov (%p35_p0, %s33_s13), 0  ;;  %p234_p5 = scmp.eq.s32.totalorder %s832_s12, 1 }
   0x9   : > { %p1163_p4 = por %p228_p2, %p227_p1  ;;  %s212_s16 = ssub.s32 %s1060_s9, %s1332_s13 }
   0xa   : > { %p835_p6 = scmp.ge.s32.totalorder %s1064_s10, 1  ;;  %p215_p7 = scmp.eq.s32.totalorder %s212_s16, 0 }
   0xb   : > { %p1170_p8 = por %p234_p5, %p233_p3  ;;  %p283_p9 = scmp.lt.s32.totalorder %s1064_s10, 3 }
   0xc   : > { %s1176_s18 = scalar_select %p215_p7, %s1052_s29, %s217_s14  }
   0xd   : > { %p284_p10 = pnand %p835_p6, %p283_p9 }
   0xe   : > { %p319_p11 = scmp.lt.s32.totalorder (!%p284_p10), %s1056_s30, 1  ;;  %s1068_s20 = smov (!%p284_p10), 96  }
   0xf   : > { %287 = sbr.rel (%p284_p10) target bundleno = 1728 (0x6c0), region = 52  ;;  %s1069_s21 = smov (!%p284_p10), 112  }
  0x10   : > { %s1070_s22 = smov (!%p284_p10), 80   ;;  %s849_s11 = sshll.u32 (!%p284_p10), %s1056_s30, 7 }
  0x14   : > { %v1181_v0 = vld [vmem:[%s1322_s7] sm:$0xff]  ;;  %v1066_v1 = vmov 0   ;;  %v1067_v2 = vmov 1   ;;  %vm370_vm0 = vcmask 64512   ;;  %v346_v4 = vld [vmem:[%s1317_s2 + $0x10] sm:$0xff]  ;;  %s320_s25 = scalar_select %p319_p11, %s1056_s30, 1  ;;  %v441_v49 = vlaneseq }
  0x15   : > { %952 = vset.pattern.permute.xlu0 %v1066_v1  ;;  %954 = vset.pattern.permute.xlu1 %v1066_v1  ;;  %v961_v3 = vld [vmem:[%s1316_s1] sm:$0xff]   ;;  %vm377_vm1 = vcmask 1043456   ;;  %v962_v12 = vld [vmem:[%s1316_s1 + $0x8] ss:$0 sps:$4 sm:$0xff]   ;;  %vm484_vm2 = vcmask 385280   ;;  %vm453_vm3 = vcmask 254080  }
  0x16   : > { %331 = vperm.xlu0 %952, %v1181_v0   ;;  %863 = vmatprep.mubr.msk.bf16.mxu0 %vm370_vm0, %v961_v3  ;;  %s837_s26 = sshll.u32 %s320_s25, 3  ;;  %vm515_vm4 = vcmask 516480   ;;  %vm429_vm5 = vcmask 122880   ;;  %v344_v40 = vld [vmem:[%s1317_s2] sm:$0xff]  ;;  %v442_v50 = vshrl.u32 %v441_v49, 7  ;;  %vm446_vm6 = vcmask 130048  }
  0x17   : > { %359 = vperm.xlu1 %954, %v346_v4   ;;  %s325_s14 = scalar_lea.vmem %s1315_s0, %s837_s26  ;;  %vm1072_vm7 = vmmov 0   ;;  %vm482_vm8 = vcmask 261248   ;;  %vm513_vm9 = vcmask 392448   ;;  %vm544_vm10 = vcmask 523648   ;;  %s316_s25 = sand.u32 1, %s1048_s28  }
  0x18   : > { %v1199_v6 = vld [vmem:[%s325_s14] sm:$0xff]  ;;  %v443_v51 = vsub.s32 0, %v442_v50  ;;  %vm600_vm11 = vcmask 523264   ;;  %s836_s26 = sshll.u32 %s316_s25, 3  ;;  %s746_s30 = scalar_lea.sflag [#allocation4], %s316_s25 }
  0x19   : > { %s318_s12 = scalar_lea.vmem [#allocation3], %s836_s26 }
  0x1a   : > { %953 = vset.pattern.permute.xlu0 %v1067_v2  ;;  %s760_s14 = sshll.u32 %s318_s12, 4  ;;  %s1270_s14 = int_to_ptr.vmem [resolvable:$true] %s760_s14 }
  0x1b   : > { %336 = vperm.xlu0 %953, %v1181_v0  }
  0x91   : > { %v332_v5 = vpop.permute.xlu0 %331 }
  0x92   : > { %v334_v7 = vmul.f32 %v332_v5, %v1199_v6  ;;  %v360_v13 = vpop.permute.xlu1 %359 }
  0x96   : > { %v337_v8 = vpop.permute.xlu0 %336 }
  0x97   : > { %v339_v9 = vadd.f32 %v337_v8, %v334_v7 }
  0x99   : > { %v343_v10 = vpack.c.bf16 %v339_v9, %v339_v9 }
  0x9b   : > { %885 = vmatprep.subr.msk.bf16.mxu0 %vm377_vm1, %v343_v10  ;;  %v379_v11 = vsel %vm377_vm1, %v343_v10, 0 }
  0x9c   : > { %862 = vmatpush3.bf16.msra.mxu0 %v379_v11  ;;  %v345_v11 = vld [vmem:[%s1317_s2 + $0x8] sm:$0xff] }
  0x9f   : > { %864 = vmatmul.mubr.msk.bf16.vlgmr.msra.gmra.mxu0 %vm370_vm0, %v962_v12 }
 0x15f   : > { %v865_v14 = vpop.f32.mrf.mxu0 }
 0x160   : > { %v424_v15 = vadd.f32 %v865_v14, %v360_v13 }
 0x161   : > { %v1208_v16 = vpop.f32.mrf.mxu0 }
 0x162   : > { %v485_v17 = vsel %vm484_vm2, %v424_v15, -inf  ;;  %v454_v18 = vsel %vm453_vm3, %v424_v15, -inf  ;;  %v516_v20 = vsel %vm515_vm4, %v424_v15, -inf  ;;  %v430_v33 = vsel %vm429_vm5, %v424_v15, -inf }
 0x163   : > { %486 = vmax.xlane.f32.xlu0 %v485_v17  ;;  %455 = vmax.xlane.f32.xlu1 %v454_v18  ;;  %v866_v19 = vpop.f32.mrf.mxu0  ;;  %v1071_v18 = vmov 0.0  }
 0x164   : > { %867 = vmatprep.subr.bf16.mxu1 %v1071_v18  ;;  %873 = vmatprep.subr.bf16.mxu0 %v1071_v18  ;;  %v1073_v19 = vmov 4  }
 0x165   : > { %869 = vmatprep.mubr.msk.bf16.mxu1 %vm1072_vm7, %v1071_v18  ;;  %875 = vmatprep.mubr.msk.bf16.mxu0 %vm1072_vm7, %v1071_v18 }
 0x166   : > { %955 = vset.pattern.permute.xlu0 %v1073_v19 }
 0x167   : > { %517 = vmax.xlane.f32.xlu1 %v516_v20  ;;  %v1074_v20 = vmov 2  }
 0x1ec   : > { %v487_v21 = vpop.xlane.xlu0 %486  ;;  %v456_v22 = vpop.xlane.xlu1 %455 }
 0x1ed   : > { %v488_v23 = vsub.f32 %v424_v15, %v487_v21  ;;  %v457_v24 = vsub.f32 %v424_v15, %v456_v22  ;;  %v1075_v21 = vmov 3  }
 0x1ef   : > { %v489_v25 = vmul.f32 1.442695, %v488_v23  ;;  %v458_v26 = vmul.f32 1.442695, %v457_v24  ;;  %v418_v23 = vpop.f32.mrf.mxu0 }
 0x1f0   : > { %v518_v27 = vpop.xlane.xlu1 %517 }
 0x1f1   : > { %964 = vpow2.f32 %v489_v25  ;;  %v519_v28 = vsub.f32 %v424_v15, %v518_v27 }
 0x1f2   : > { %966 = vpow2.f32 %v458_v26 }
 0x1f3   : > { %v520_v29 = vmul.f32 1.442695, %v519_v28 }
 0x1f5   : > { %968 = vpow2.f32 %v520_v29 }
 0x1fe   : > { %v965_v30 = vpop.eup %964 }
 0x1ff   : > { %v967_v31 = vpop.eup %966  ;;  %492 = vrot.lane.b32.xlu1 %v965_v30, %s1068_s20 }
 0x200   : > { %461 = vrot.lane.b32.xlu0 %v967_v31, %s1069_s21 }
 0x202   : > { %v969_v32 = vpop.eup %968 }
 0x203   : > { %523 = vrot.lane.b32.xlu1 %v969_v32, %s1070_s22 }
 0x21f   : > { %431 = vmax.xlane.f32.xlu0 %v430_v33 }
 0x271   : > { %v493_v34 = vpop.permute.xlu1 %492 }
 0x272   : > { %v462_v35 = vpop.permute.xlu0 %461  ;;  %v495_v36 = vsel %vm429_vm5, %v493_v34, 0.0 }
 0x273   : > { %v464_v37 = vsel %vm429_vm5, %v462_v35, 0.0  ;;  %496 = vadd.xlane.f32.xlu0 %v495_v36  ;;  %v546_v36 = vld [vmem:[%s1318_s3] sm:$0xf] }
 0x274   : > { %465 = vadd.xlane.f32.xlu1 %v464_v37  ;;  %v616_v37 = vld [vmem:[%s1320_s5] sm:$0xff] }
 0x275   : > { %v524_v38 = vpop.permute.xlu1 %523 }
 0x276   : > { %v526_v39 = vsel %vm429_vm5, %v524_v38, 0.0  ;;  %v617_v38 = vld [vmem:[%s1320_s5 + $0x8] sm:$0xff] }
 0x277   : > { %527 = vadd.xlane.f32.xlu0 %v526_v39 }
 0x285   : > { %349 = vperm.xlu1 %954, %v344_v40  }
 0x2a8   : > { %v432_v41 = vpop.xlane.xlu0 %431 }
 0x2a9   : > { %v433_v42 = vsub.f32 %v424_v15, %v432_v41 }
 0x2ab   : > { %v434_v43 = vmul.f32 1.442695, %v433_v42 }
 0x2ad   : > { %970 = vpow2.f32 %v434_v43 }
 0x2ba   : > { %v971_v44 = vpop.eup %970 }
 0x2bb   : > { %v436_v45 = vsel %vm429_vm5, %v971_v44, 0.0 }
 0x2bc   : > { %437 = vadd.xlane.f32.xlu0 %v436_v45 }
 0x2fc   : > { %v497_v46 = vpop.xlane.xlu0 %496 }
 0x2fd   : > { %v466_v47 = vpop.xlane.xlu1 %465  ;;  %972 = vrcp.f32 %v497_v46 }
 0x2fe   : > { %974 = vrcp.f32 %v466_v47 }
 0x300   : > { %v528_v48 = vpop.xlane.xlu0 %527 }
 0x301   : > { %976 = vrcp.f32 %v528_v48  ;;  %v350_v53 = vpop.permute.xlu1 %349 }
 0x302   : > { %v416_v57 = vadd.f32 %v1208_v16, %v350_v53  ;;  %v963_v53 = vld [vmem:[%s1319_s4] sm:$0xff]  }
 0x30a   : > { %v973_v52 = vpop.eup %972 }
 0x30b   : > { %v975_v54 = vpop.eup %974  ;;  %v499_v55 = vmul.f32 %v973_v52, %v965_v30 }
 0x30c   : > { %v468_v56 = vmul.f32 %v975_v54, %v967_v31 }
 0x30d   : > { %v503_v58 = vrot.slane %v499_v55, %v443_v51 }
 0x30e   : > { %v977_v59 = vpop.eup %976  ;;  %v472_v60 = vrot.slane %v468_v56, %v443_v51 }
 0x30f   : > { %v504_v61 = vmul.f32 %v503_v58, %v416_v57  ;;  %v530_v62 = vmul.f32 %v977_v59, %v969_v32 }
 0x310   : > { %v473_v63 = vmul.f32 %v472_v60, %v416_v57 }
 0x311   : > { %506 = vrot.lane.b32.xlu1 %v504_v61, %s1068_s20  ;;  %v534_v2 = vrot.slane %v530_v62, %v443_v51  ;;  %s1268_s20 = scalar_lea.hbm %s1323_s8, %s849_s11 }
 0x312   : > { %475 = vrot.lane.b32.xlu0 %v473_v63, %s1069_s21  ;;  %s988_s21 = scalar_lea.vmem %s1270_s14, 128 }
 0x313   : > { %v535_v3 = vmul.f32 %v534_v2, %v416_v57  ;;  %p989_p12 = scmp.ne.s32.totalorder %s1270_s14, %s988_s21 }
 0x315   : > { %537 = vrot.lane.b32.xlu1 %v535_v3, %s1070_s22  ;;  %p990_p13 = pnand %p989_p12, %p1163_p4  ;;  %s1077_s22 = smov [#allocation3]  }
 0x316   : > { %s992_s23 = sshll.u32 %s1077_s22, 4  ;;  %s993_s23 = int_to_ptr.vmem [resolvable:$false] %s992_s23 }
 0x317   : > { %p991_p0 = pneg %p990_p13  ;;  %s994_s24 = scalar_lea.vmem %s993_s23, 256 }
 0x318   : > { %p995_p1 = scmp.lt.s32.totalorder %s1270_s14, %s993_s23  ;;  %p996_p2 = scmp.lt.s32.totalorder %s994_s24, %s988_s21 }
 0x31a   : > { %p997_p3 = por %p996_p2, %p995_p1 }
 0x31c   : > { %p998_p5 = pnand %p997_p3, %p991_p0 }
 0x345   : > { %v438_v4 = vpop.xlane.xlu0 %437 }
 0x346   : > { %978 = vrcp.f32 %v438_v4 }
 0x353   : > { %v979_v5 = vpop.eup %978 }
 0x354   : > { %v440_v7 = vmul.f32 %v979_v5, %v971_v44 }
 0x356   : > { %v444_v8 = vrot.slane %v440_v7, %v443_v51 }
 0x358   : > { %v445_v9 = vmul.f32 %v444_v8, %v416_v57 }
 0x35a   : > { %v447_v10 = vsel %vm446_vm6, %v445_v9, 0.0 }
 0x35b   : > { %448 = vadd.xlane.f32.xlu1 %v447_v10 }
 0x36c   : > { %354 = vperm.xlu1 %954, %v345_v11   ;;  %v694_v11 = vld [vmem:[%s1321_s6] sm:$0xf] }
 0x370   : > { %956 = vset.pattern.permute.xlu1 %v1074_v20 }
 0x371   : > { %604 = vperm.xlu1 %956, %v1181_v0  }
 0x375   : > { %957 = vset.pattern.permute.xlu1 %v1075_v21 }
 0x376   : > { %609 = vperm.xlu1 %957, %v1181_v0  }
 0x37a   : > { %958 = vset.pattern.permute.xlu1 %v1066_v1 }
 0x37b   : > { %620 = vperm.xlu1 %958, %v616_v37  }
 0x37f   : > { %625 = vperm.xlu1 %958, %v617_v38  }
 0x383   : > { %v507_v12 = vpop.permute.xlu1 %506 }
 0x384   : > { %v476_v13 = vpop.permute.xlu0 %475  ;;  %v509_v15 = vsel %vm446_vm6, %v507_v12, 0.0 }
 0x385   : > { %v478_v14 = vsel %vm446_vm6, %v476_v13, 0.0 }
 0x386   : > { %479 = vadd.xlane.f32.xlu0 %v478_v14 }
 0x387   : > { %v538_v16 = vpop.permute.xlu1 %537 }
 0x388   : > { %v540_v17 = vsel %vm446_vm6, %v538_v16, 0.0 }
 0x38a   : > { %510 = vadd.xlane.f32.xlu0 %v509_v15 }
 0x38e   : > { %541 = vadd.xlane.f32.xlu0 %v540_v17 }
 0x3a4   : > { %550 = vperm.xlu0 %955, %v1181_v0  }
 0x3e4   : > { %v449_v22 = vpop.xlane.xlu1 %448 }
 0x3e8   : > { %v355_v24 = vpop.permute.xlu1 %354 }
 0x3e9   : > { %v419_v25 = vadd.f32 %v418_v23, %v355_v24 }
 0x3eb   : > { %v450_v26 = vmax.f32 %v419_v25, 0.0 }
 0x3ec   : > { %v605_v46 = vpop.permute.xlu1 %604 }
 0x3ed   : > { %v451_v27 = vmul.f32 %v450_v26, %v449_v22 }
 0x3ef   : > { %452 = vst.msk [vmem:[#allocation2] sm:$0xff] %vm446_vm6, %v451_v27 }
 0x3f1   : > { %v610_v48 = vpop.permute.xlu1 %609 }
 0x3f6   : > { %v621_v54 = vpop.permute.xlu1 %620 }
 0x3fa   : > { %v626_v59 = vpop.permute.xlu1 %625 }
 0x40f   : > { %v480_v28 = vpop.xlane.xlu0 %479 }
 0x410   : > { %v481_v29 = vmul.f32 %v480_v28, %v450_v26 }
 0x412   : > { %483 = vst.msk [vmem:[#allocation2] sm:$0xff] %vm482_vm8, %v481_v29 }
 0x413   : > { %v511_v30 = vpop.xlane.xlu0 %510 }
 0x414   : > { %v512_v31 = vmul.f32 %v511_v30, %v450_v26 }
 0x416   : > { %514 = vst.msk [vmem:[#allocation2] sm:$0xff] %vm513_vm9, %v512_v31 }
 0x417   : > { %v542_v32 = vpop.xlane.xlu0 %541 }
 0x418   : > { %v543_v33 = vmul.f32 %v542_v32, %v450_v26 }
 0x41a   : > { %545 = vst.msk [vmem:[#allocation2] sm:$0xff] %vm544_vm10, %v543_v33 }
 0x41f   : > { %v551_v39 = vpop.permute.xlu0 %550 }
 0x421   : > { %v547_v1 = vld [vmem:[#allocation2] sm:$0xff] }
 0x422   : > { %v548_v34 = vpack.c.bf16 %v547_v1, %v547_v1 }
 0x424   : > { %v557_v35 = vsel %vm377_vm1, %v548_v34, 0 }
 0x425   : > { %868 = vmatpush3.bf16.msra.mxu1 %v557_v35 }
 0x426   : > { %879 = vmatprep.subr.bf16.mxu1 %v1071_v18 }
 0x428   : > { %870 = vmatmul.mubr.msk.bf16.vlgmr.msra.gmra.mxu1 %vm370_vm0, %v546_v36 }
 0x429   : > { %881 = vmatprep.mubr.msk.bf16.mxu1 %vm1072_vm7, %v1071_v18 }
 0x4e8   : > { %v593_v40 = vpop.f32.mrf.mxu1 }
 0x4e9   : > { %v594_v41 = vadd.f32 %v593_v40, %v551_v39 }
 0x4ea   : > { %v871_v42 = vpop.f32.mrf.mxu1 }
 0x4eb   : > { %v599_v43 = vadd.f32 %v594_v41, %v1199_v6  ;;  %v1076_v6 = vmov 5  }
 0x4ec   : > { %v596_v44 = vpop.f32.mrf.mxu1  ;;  %959 = vset.pattern.permute.xlu1 %v1076_v6  ;;  %960 = vset.pattern.permute.xlu0 %v1076_v6 }
 0x4ed   : > { %601 = vst.msk [vmem:[#allocation2] sm:$0xff] %vm600_vm11, %v599_v43  ;;  %697 = vperm.xlu1 %959, %v1181_v0  }
 0x4ee   : > { %v872_v45 = vpop.f32.mrf.mxu1 }
 0x4f4   : > { %v602_v47 = vld [vmem:[#allocation2] sm:$0xff] }
 0x4f5   : > { %v607_v49 = vmul.f32 %v605_v46, %v602_v47 }
 0x4f7   : > { %v612_v50 = vadd.f32 %v610_v48, %v607_v49 }
 0x4f9   : > { %v615_v51 = vpack.c.bf16 %v612_v50, %v612_v50 }
 0x4fb   : > { %v637_v52 = vsel %vm377_vm1, %v615_v51, 0 }
 0x4fc   : > { %874 = vmatpush3.bf16.msra.mxu0 %v637_v52 }
 0x4ff   : > { %876 = vmatmul.mubr.msk.bf16.vlgmr.msra.gmra.mxu0 %vm370_vm0, %v963_v53 }
 0x568   : > { %v698_v12 = vpop.permute.xlu1 %697 }
 0x5bf   : > { %v673_v55 = vpop.f32.mrf.mxu0 }
 0x5c0   : > { %v674_v56 = vadd.f32 %v673_v55, %v621_v54 }
 0x5c1   : > { %v877_v57 = vpop.f32.mrf.mxu0 }
 0x5c2   : > { %v845_v58 = vmul.f32 -1.442695, %v674_v56 }
 0x5c3   : > { %v676_v60 = vpop.f32.mrf.mxu0 }
 0x5c4   : > { %980 = vpow2.f32 %v845_v58  ;;  %v677_v61 = vadd.f32 %v676_v60, %v626_v59 }
 0x5c5   : > { %v878_v62 = vpop.f32.mrf.mxu0 }
 0x5c6   : > { %v846_v63 = vmul.f32 -1.442695, %v677_v61 }
 0x5c8   : > { %982 = vpow2.f32 %v846_v63 }
 0x5d1   : > { %v981_v2 = vpop.eup %980 }
 0x5d2   : > { %v686_v3 = vadd.f32 1.0, %v981_v2 }
 0x5d4   : > { %984 = vrcp.f32 %v686_v3 }
 0x5d5   : > { %v983_v4 = vpop.eup %982 }
 0x5d6   : > { %v687_v5 = vadd.f32 1.0, %v983_v4 }
 0x5d8   : > { %986 = vrcp.f32 %v687_v5 }
 0x5e1   : > { %v985_v0 = vpop.eup %984 }
 0x5e2   : > { %v692_v8 = vmul.f32 %v985_v0, %v674_v56 }
 0x5e5   : > { %v987_v7 = vpop.eup %986 }
 0x5e6   : > { %v693_v9 = vmul.f32 %v987_v7, %v677_v61 }
 0x5e8   : > { %v695_v10 = vpack.c.bf16 %v693_v9, %v692_v8 }
 0x5ea   : > { %880 = vmatpush3.bf16.msra.mxu1 %v695_v10 }
 0x5ed   : > { %882 = vmatmul.mubr.msk.bf16.vlgmr.msra.gmra.mxu1 %vm446_vm6, %v694_v11 }
 0x6ad   : > { %v737_v13 = vpop.f32.mrf.mxu1 }
 0x6ae   : > { %v738_v14 = vadd.f32 %v737_v13, %v698_v12 }
 0x6af   : > { %v883_v15 = vpop.f32.mrf.mxu1 }
 0x6b0   : > { %v743_v16 = vadd.f32 %v738_v14, %v602_v47 }
 0x6b1   : > { %v740_v17 = vpop.f32.mrf.mxu1 }
 0x6b2   : > { %744 = vst.msk [vmem:[%s318_s12] sm:$0xff] %vm600_vm11, %v743_v16 }
 0x6b3   : > { %v884_v18 = vpop.f32.mrf.mxu1 }
 0x6b4   : > { %1001 = shalt.err (!%p998_p5)
}
 0x6b5   : > { %s1002_s26 = scalar_lea.hbm %s1268_s20, 128  ;;  %s1006_s12 = scalar_lea.hbm %s1323_s8, 256 }
 0x6b6   : > { %p1003_p6 = scmp.ne.s32.totalorder %s1268_s20, %s1002_s26  ;;  %p1007_p10 = scmp.lt.s32.totalorder %s1268_s20, %s1323_s8 }
 0x6b7   : > { %p1008_p11 = scmp.lt.s32.totalorder %s1006_s12, %s1002_s26 }
 0x6b8   : > { %p1004_p7 = pnand %p1003_p6, %p1163_p4 }
 0x6b9   : > { %p1009_p12 = por %p1008_p11, %p1007_p10 }
 0x6ba   : > { %p1005_p9 = pneg %p1004_p7 }
 0x6bc   : > { %p1010_p13 = pnand %p1009_p12, %p1005_p9 }
 0x6be   : > { %1013 = shalt.err (!%p1010_p13)
}
 0x6bf   : > { %886 = dma.vmem_to_hbm [thread:$0]  (%p1163_p4), %s1270_s14, 128, %s1268_s20, %s746_s30  }
 0x6c0 PF: > { %p892_p0 = scmp.ge.s32.totalorder %s1064_s10, 2  ;;  %s772_s21 = sand.u32 1, %s1044_s27  }
 0x6c1   : > { %s773_s22 = scalar_lea.sflag [#allocation4], %s772_s21 }
 0x6c2   : > { %p889_p1 = pnand %p892_p0, %p1170_p8 }
 0x6c4   : > { %p890_p2 = pneg %p889_p1 }
 0x6c6   : > { %1039 = dma.done.wait (%p890_p2), %s773_s22, 128  }
 0x6c7   : > { %1041 = vsyncadd (%p890_p2), %s773_s22, 4294967168  ;;  %s21_s10 = sadd.s32 1, %s1064_s10   ;;  %s1326_s27 = smov %s1048_s28 }
 0x6c8   : > { %p18_p3 = scmp.ge.s32.totalorder %s21_s10, 4   ;;  %s1327_s28 = smov %s1052_s29 }
 0x6c9   : > { %s1328_s29 = smov %s1176_s18  ;;  %s1329_s30 = smov %s1060_s9 }
 0x6ca   : > { %s1330_s9 = smov %s1332_s13  ;;  %20 = sbr.rel (!%p18_p3) target bundleno = 4 (0x4), region = 87 }
 0x6cf   :  { %778 = vsyncpa [#allocation4], 1 }
 0x6d0   :  { %780 = vsyncpa [#allocation4 + $0x1], 1 }

</bundles_post_ra>
